<compile_context>
chip_gen: v6e
topology: v6e:2x2x1
jax: 0.10.0
libtpu: 0.0.40
codegen_flags: <defaults>
</compile_context>

<pallas_src>
import jax
import jax.numpy as jnp
from jax.experimental import pallas as pl
from jax.experimental.pallas import tpu as pltpu


# ConvTranspose2d(k=4, s=2, p=1) phase decomposition.  Output pixel (2i+ph,
# 2j+pw) reads 1-zero-padded input rows i+ro / cols j+cofs with ro,cofs in
# {0,1,2}.  _CONTRIB maps a window offset to its (phase, kernel_tap) terms.
_CONTRIB = {0: ((0, 3),), 1: ((0, 1), (1, 2)), 2: ((1, 0),)}


def _pack_weight(w_hwio):
    """Pack the (4,4,Ci,Co) HWIO deconv weight into (2, 6*Ci, 2*Co).

    w_packed[ph] multiplies an im2col patch whose K axis is ordered
    (row_tap t in {0,1}, col_offset cofs in {0,1,2}, ci) and produces the
    (pw, co) output columns for output row-phase ph."""
    _, _, ci, co = w_hwio.shape
    wp = jnp.zeros((3, 3, ci, 2, 2, co), w_hwio.dtype)
    for ro in range(3):
        for (ph, kh) in _CONTRIB[ro]:
            for cofs in range(3):
                for (pw, kw) in _CONTRIB[cofs]:
                    wp = wp.at[ro, cofs, :, ph, pw, :].set(w_hwio[kh, kw])
    w0 = wp[0:2, :, :, 0, :, :].reshape(6 * ci, 2 * co)   # row-phase 0: ro in {0,1}
    w1 = wp[1:3, :, :, 1, :, :].reshape(6 * ci, 2 * co)   # row-phase 1: ro in {1,2}
    return jnp.stack([w0, w1], axis=0)


def _deconv_stats_kernel(xp_ref, w_ref, y_ref, stat_ref):
    # xp_ref:   (1, H+2, W+2, Ci)    zero-padded NHWC(+coords) input, resident across H-tiles
    # w_ref:    (2, 6*Ci, 2*Co)      packed deconv weight (one GEMM per row-phase)
    # y_ref:    (1, TH, 2, W, 2*Co)  y[0,i,ph,j,pw*Co+co] = deconv[2*(hs+i)+ph, 2j+pw, co]
    # stat_ref: (1, 1, 2, 2*Co)      per-block [sum, sum_of_squares] per (pw, co)
    _, _, wpad, ci = xp_ref.shape
    w = wpad - 2
    th = y_ref.shape[1]
    co = w_ref.shape[-1] // 2
    hstart = pl.multiple_of(pl.program_id(1) * th, th)

    # Three row-shifted views of the padded input tile, each (TH, W+2, Ci).
    rows = [xp_ref[0, pl.ds(hstart + ro, th), :, :] for ro in range(3)]

    s = jnp.zeros((1, 2 * co), jnp.float32)
    ss = jnp.zeros((1, 2 * co), jnp.float32)
    for ph in range(2):
        # im2col patch for this row-phase: K ordered (row_tap, col_offset, ci).
        patch = jnp.concatenate(
            [rows[ro][:, cofs:cofs + w, :] for ro in (ph, ph + 1) for cofs in range(3)],
            axis=-1)                                          # (TH, W, 6*Ci)
        patch = patch.reshape(th * w, 6 * ci)
        yph = jnp.dot(patch, w_ref[ph],
                      preferred_element_type=jnp.float32)     # (TH*W, 2*Co)
        y_ref[0, :, ph, :, :] = yph.reshape(th, w, 2 * co)
        s = s + jnp.sum(yph, axis=0, keepdims=True)
        ss = ss + jnp.sum(yph * yph, axis=0, keepdims=True)
    stat_ref[0, 0, 0:1, :] = s
    stat_ref[0, 0, 1:2, :] = ss


def _bn_relu_kernel(x_ref, scale_ref, shift_ref, o_ref):
    # Lane-dense fused affine batch-norm + ReLU.
    # x_ref / o_ref: (1, TH, 2, 2*W*Co); scale/shift: (1, 2*W*Co)
    # (per-channel params tiled along the lane dim).
    o_ref[...] = jnp.maximum(x_ref[...] * scale_ref[0] + shift_ref[0], 0.0)


def _add_coords(x_nhwc):
    # CoordConv: append 2 coordinate channels normalized to [-1, 1]
    # (first varies along H, second along W).
    n, h, w, _ = x_nhwc.shape
    ch = jnp.broadcast_to(jnp.linspace(-1.0, 1.0, h)[:, None], (h, w))
    cw = jnp.broadcast_to(jnp.linspace(-1.0, 1.0, w)[None, :], (h, w))
    coords = jnp.broadcast_to(jnp.stack([ch, cw], axis=-1)[None], (n, h, w, 2))
    return jnp.concatenate([x_nhwc, coords.astype(x_nhwc.dtype)], axis=-1)


@jax.jit
def up_forward(x1, x2, w_hwio, gamma, beta, eps=1e-5):
    """x1, x2: NCHW float32. Returns NCHW float32 of shape (N, out_c, 2H, 2W)."""
    # TODO(synk): input prep (concat / NCHW->NHWC / coords / 1-px zero pad) stays
    # in XLA; it touches ~1/8 of the bytes of the output path, and fusing the
    # halo/coords into the kernel would add boundary masking.
    x = jnp.concatenate([x1, x2], axis=1)                     # (N, in_c, H, W)
    x = jnp.transpose(x, (0, 2, 3, 1))                        # NHWC
    xc = _add_coords(x)                                       # (N, H, W, Ci)
    n, h, w, ci = xc.shape
    co = w_hwio.shape[-1]
    xp = jnp.pad(xc, ((0, 0), (1, 1), (1, 1), (0, 0)))        # (N, H+2, W+2, Ci)
    w_packed = _pack_weight(w_hwio)                           # (2, 6*Ci, 2*Co)

    th = 8 if h % 8 == 0 else h                               # H tile (sublane multiple)
    nh = h // th
    lane = 2 * w * co                                         # dense lane width

    # ---- transposed convolution + BN partial statistics (one pass) ----
    y, stats = pl.pallas_call(
        _deconv_stats_kernel,
        out_shape=(jax.ShapeDtypeStruct((n, h, 2, w, 2 * co), jnp.float32),
                   jax.ShapeDtypeStruct((n, nh, 2, 2 * co), jnp.float32)),
        grid=(n, nh),
        in_specs=[
            pl.BlockSpec((1, h + 2, w + 2, ci), lambda b, t: (b, 0, 0, 0)),
            pl.BlockSpec((2, 6 * ci, 2 * co), lambda b, t: (0, 0, 0)),
        ],
        out_specs=(
            pl.BlockSpec((1, th, 2, w, 2 * co), lambda b, t: (b, t, 0, 0, 0)),
            pl.BlockSpec((1, 1, 2, 2 * co), lambda b, t: (b, t, 0, 0)),
        ),
        compiler_params=pltpu.CompilerParams(
            dimension_semantics=("parallel", "parallel")),
    )(xp, w_packed)

    # Training-mode BatchNorm2d statistics from the kernel's partial sums
    # (tiny (N*nh, 2*Co) reduction -- no extra pass over y).
    cnt = n * (2 * h) * (2 * w)
    total = stats[:, :, 0, :].sum(axis=(0, 1)).reshape(2, co).sum(axis=0)
    totsq = stats[:, :, 1, :].sum(axis=(0, 1)).reshape(2, co).sum(axis=0)
    mean = total / cnt
    var = totsq / cnt - mean * mean                           # biased (training) variance
    scale = gamma * jax.lax.rsqrt(var + eps)
    shift = beta - mean * scale
    scale_l = jnp.tile(scale, 2 * w).reshape(1, lane)
    shift_l = jnp.tile(shift, 2 * w).reshape(1, lane)

    # Free bitcast: (N, H, 2, W, 2*Co) row-major == (N, 2H, 2W, Co) row-major,
    # so the phase->spatial interleave costs no extra HBM pass.
    y_dense = y.reshape(n, h, 2, lane)

    # ---- fused BN + ReLU over lane-dense blocks ----
    out = pl.pallas_call(
        _bn_relu_kernel,
        out_shape=jax.ShapeDtypeStruct((n, h, 2, lane), jnp.float32),
        grid=(n, nh),
        in_specs=[
            pl.BlockSpec((1, th, 2, lane), lambda b, t: (b, t, 0, 0)),
            pl.BlockSpec((1, lane), lambda b, t: (0, 0)),
            pl.BlockSpec((1, lane), lambda b, t: (0, 0)),
        ],
        out_specs=pl.BlockSpec((1, th, 2, lane), lambda b, t: (b, t, 0, 0)),
        compiler_params=pltpu.CompilerParams(
            dimension_semantics=("parallel", "parallel")),
    )(y_dense, scale_l, shift_l)

    out = out.reshape(n, 2 * h, 2 * w, co)                    # free bitcast
    # TODO(synk): final NHWC->NCHW relayout left to XLA to match the PyTorch
    # interface; drop it if the downstream consumer accepts NHWC.
    return jnp.transpose(out, (0, 3, 1, 2))


def up_reference(x1, x2, w_hwio, gamma, beta, eps=1e-5):
    """Pure-JAX reference (XLA conv) with identical semantics, for validation."""
    x = jnp.concatenate([x1, x2], axis=1)
    xc = _add_coords(jnp.transpose(x, (0, 2, 3, 1)))
    w_conv = w_hwio[::-1, ::-1, :, :]     # flip taps -> ordinary dilated conv
    y = jax.lax.conv_general_dilated(
        xc, w_conv, window_strides=(1, 1), padding=[(2, 2), (2, 2)],
        lhs_dilation=(2, 2), dimension_numbers=("NHWC", "HWIO", "NHWC"),
        precision=jax.lax.Precision.HIGHEST)
    mean = jnp.mean(y, axis=(0, 1, 2))
    var = jnp.mean(jnp.square(y - mean), axis=(0, 1, 2))
    y = jnp.maximum((y - mean) / jnp.sqrt(var + eps) * gamma + beta, 0.0)
    return jnp.transpose(y, (0, 3, 1, 2))


if __name__ == "__main__":
    key = jax.random.PRNGKey(0)
    k1, k2, kw = jax.random.split(key, 3)
    N, C1, C2, H, W = 2, 4, 4, 16, 16
    in_c = C1 + C2          # channels after torch.cat([x1, x2], dim=1)
    out_c = 16

    x1 = jax.random.normal(k1, (N, C1, H, W), jnp.float32)
    x2 = jax.random.normal(k2, (N, C2, H, W), jnp.float32)
    # ConvTranspose2d(in_c + 2, out_c, 4, stride=2, padding=1, bias=False) weight,
    # stored HWIO: w_hwio[kh, kw, ci, co] == torch_weight[ci, co, kh, kw].
    w_hwio = 0.1 * jax.random.normal(kw, (4, 4, in_c + 2, out_c), jnp.float32)
    gamma = jnp.ones((out_c,), jnp.float32)    # BatchNorm2d default init
    beta = jnp.zeros((out_c,), jnp.float32)

    out = jax.block_until_ready(up_forward(x1, x2, w_hwio, gamma, beta))
    assert out.shape == (N, out_c, 2 * H, 2 * W), out.shape

    ref = up_reference(x1, x2, w_hwio, gamma, beta)
    assert jnp.allclose(out, ref, atol=2e-3, rtol=2e-3), (
        "max abs err = %g" % float(jnp.max(jnp.abs(out - ref))))
    print("KERNEL_OK")
</pallas_src>

<mosaic_0001>
module attributes {stable_mosaic.version = 11 : i64} {
  func.func @_deconv_stats_kernel(%arg0: i32, %arg1: i32, %arg2: memref<1x18x18x10xf32, #tpu.memory_space<vmem>>, %arg3: memref<2x60x32xf32, #tpu.memory_space<vmem>>, %arg4: memref<1x8x2x16x32xf32, #tpu.memory_space<vmem>>, %arg5: memref<1x1x2x32xf32, #tpu.memory_space<vmem>>) attributes {dimension_semantics = [#tpu.dimension_semantics<parallel>, #tpu.dimension_semantics<parallel>], iteration_bounds = array<i64: 2, 2>, scalar_prefetch = 0 : i64, scratch_operands = 0 : i64, tpu.core_type = #tpu.core_type<tc>, window_params = [{transform_indices = @transform_0, window_bounds = array<i64: 1, 18, 18, 10>}, {pipeline_mode = #tpu.pipeline_mode<synchronous>, transform_indices = @transform_1, window_bounds = array<i64: 2, 60, 32>}, {transform_indices = @transform_2, window_bounds = array<i64: 1, 8, 2, 16, 32>}, {transform_indices = @transform_3, window_bounds = array<i64: 1, 1, 2, 32>}]} {
    %c8_i32 = arith.constant 8 : i32
    %0 = arith.muli %arg1, %c8_i32 : i32
    %1 = tpu.assume_multiple %0, 8 : i32
    %c0_i32 = arith.constant 0 : i32
    %2 = arith.addi %1, %c0_i32 : i32
    %c0 = arith.constant 0 : index
    %3 = arith.index_cast %2 : i32 to index
    %c0_0 = arith.constant 0 : index
    %c0_1 = arith.constant 0 : index
    %4 = vector.load %arg2[%c0, %3, %c0_0, %c0_1] : memref<1x18x18x10xf32, #tpu.memory_space<vmem>>, vector<1x8x18x10xf32>
    %5 = vector.shape_cast %4 : vector<1x8x18x10xf32> to vector<8x18x10xf32>
    %c1_i32 = arith.constant 1 : i32
    %6 = arith.addi %1, %c1_i32 : i32
    %c0_2 = arith.constant 0 : index
    %7 = arith.index_cast %6 : i32 to index
    %c0_3 = arith.constant 0 : index
    %c0_4 = arith.constant 0 : index
    %8 = vector.load %arg2[%c0_2, %7, %c0_3, %c0_4] : memref<1x18x18x10xf32, #tpu.memory_space<vmem>>, vector<1x8x18x10xf32>
    %9 = vector.shape_cast %8 : vector<1x8x18x10xf32> to vector<8x18x10xf32>
    %c2_i32 = arith.constant 2 : i32
    %10 = arith.addi %1, %c2_i32 : i32
    %c0_5 = arith.constant 0 : index
    %11 = arith.index_cast %10 : i32 to index
    %c0_6 = arith.constant 0 : index
    %c0_7 = arith.constant 0 : index
    %12 = vector.load %arg2[%c0_5, %11, %c0_6, %c0_7] : memref<1x18x18x10xf32, #tpu.memory_space<vmem>>, vector<1x8x18x10xf32>
    %13 = vector.shape_cast %12 : vector<1x8x18x10xf32> to vector<8x18x10xf32>
    %cst = arith.constant 0.000000e+00 : f32
    %14 = vector.broadcast %cst : f32 to vector<1x32xf32>
    %cst_8 = arith.constant 0.000000e+00 : f32
    %15 = vector.broadcast %cst_8 : f32 to vector<1x32xf32>
    %16 = vector.extract_strided_slice %5 {offsets = [0, 0, 0], sizes = [8, 16, 10], strides = [1, 1, 1]} : vector<8x18x10xf32> to vector<8x16x10xf32>
    %17 = vector.extract_strided_slice %5 {offsets = [0, 1, 0], sizes = [8, 16, 10], strides = [1, 1, 1]} : vector<8x18x10xf32> to vector<8x16x10xf32>
    %18 = vector.extract_strided_slice %5 {offsets = [0, 2, 0], sizes = [8, 16, 10], strides = [1, 1, 1]} : vector<8x18x10xf32> to vector<8x16x10xf32>
    %19 = vector.extract_strided_slice %9 {offsets = [0, 0, 0], sizes = [8, 16, 10], strides = [1, 1, 1]} : vector<8x18x10xf32> to vector<8x16x10xf32>
    %20 = vector.extract_strided_slice %9 {offsets = [0, 1, 0], sizes = [8, 16, 10], strides = [1, 1, 1]} : vector<8x18x10xf32> to vector<8x16x10xf32>
    %21 = vector.extract_strided_slice %9 {offsets = [0, 2, 0], sizes = [8, 16, 10], strides = [1, 1, 1]} : vector<8x18x10xf32> to vector<8x16x10xf32>
    %22 = tpu.concatenate %16, %17, %18, %19, %20, %21 in 2 : vector<8x16x10xf32>, vector<8x16x10xf32>, vector<8x16x10xf32>, vector<8x16x10xf32>, vector<8x16x10xf32>, vector<8x16x10xf32> -> vector<8x16x60xf32>
    %23 = vector.shape_cast %22 : vector<8x16x60xf32> to vector<128x60xf32>
    %c0_9 = arith.constant 0 : index
    %c0_10 = arith.constant 0 : index
    %c0_11 = arith.constant 0 : index
    %24 = vector.load %arg3[%c0_9, %c0_10, %c0_11] : memref<2x60x32xf32, #tpu.memory_space<vmem>>, vector<1x60x32xf32>
    %25 = vector.shape_cast %24 : vector<1x60x32xf32> to vector<60x32xf32>
    %cst_12 = arith.constant dense<0.000000e+00> : vector<128x32xf32>
    %26 = tpu.matmul %23, %25, %cst_12 {dimension_numbers = #tpu.dot_dimension_numbers<[1], [0], [0], [1], [0, 0, 1, 1], [], []>} : vector<128x60xf32>, vector<60x32xf32>, vector<128x32xf32> -> vector<128x32xf32>
    %27 = vector.shape_cast %26 : vector<128x32xf32> to vector<8x16x32xf32>
    %c0_13 = arith.constant 0 : index
    %c0_14 = arith.constant 0 : index
    %c0_15 = arith.constant 0 : index
    %c0_16 = arith.constant 0 : index
    %c0_17 = arith.constant 0 : index
    %28 = vector.load %arg4[%c0_13, %c0_14, %c0_15, %c0_16, %c0_17] : memref<1x8x2x16x32xf32, #tpu.memory_space<vmem>>, vector<1x8x1x16x32xf32>
    %29 = vector.shape_cast %28 : vector<1x8x1x16x32xf32> to vector<8x16x32xf32>
    %30 = vector.shape_cast %27 : vector<8x16x32xf32> to vector<1x8x1x16x32xf32>
    tpu.vector_store %arg4[%c0_13, %c0_14, %c0_15, %c0_16, %c0_17], %30 {strides = array<i32>} : memref<1x8x2x16x32xf32, #tpu.memory_space<vmem>>, vector<1x8x1x16x32xf32>,
    %cst_18 = arith.constant dense<0.000000e+00> : vector<32xf32>
    %31 = vector.multi_reduction <add>, %26, %cst_18 [0] : vector<128x32xf32> to vector<32xf32>
    %32 = vector.shape_cast %31 : vector<32xf32> to vector<1x32xf32>
    %33 = arith.addf %14, %32 : vector<1x32xf32>
    %34 = arith.mulf %26, %26 : vector<128x32xf32>
    %cst_19 = arith.constant dense<0.000000e+00> : vector<32xf32>
    %35 = vector.multi_reduction <add>, %34, %cst_19 [0] : vector<128x32xf32> to vector<32xf32>
    %36 = vector.shape_cast %35 : vector<32xf32> to vector<1x32xf32>
    %37 = arith.addf %15, %36 : vector<1x32xf32>
    %38 = vector.extract_strided_slice %9 {offsets = [0, 0, 0], sizes = [8, 16, 10], strides = [1, 1, 1]} : vector<8x18x10xf32> to vector<8x16x10xf32>
    %39 = vector.extract_strided_slice %9 {offsets = [0, 1, 0], sizes = [8, 16, 10], strides = [1, 1, 1]} : vector<8x18x10xf32> to vector<8x16x10xf32>
    %40 = vector.extract_strided_slice %9 {offsets = [0, 2, 0], sizes = [8, 16, 10], strides = [1, 1, 1]} : vector<8x18x10xf32> to vector<8x16x10xf32>
    %41 = vector.extract_strided_slice %13 {offsets = [0, 0, 0], sizes = [8, 16, 10], strides = [1, 1, 1]} : vector<8x18x10xf32> to vector<8x16x10xf32>
    %42 = vector.extract_strided_slice %13 {offsets = [0, 1, 0], sizes = [8, 16, 10], strides = [1, 1, 1]} : vector<8x18x10xf32> to vector<8x16x10xf32>
    %43 = vector.extract_strided_slice %13 {offsets = [0, 2, 0], sizes = [8, 16, 10], strides = [1, 1, 1]} : vector<8x18x10xf32> to vector<8x16x10xf32>
    %44 = tpu.concatenate %38, %39, %40, %41, %42, %43 in 2 : vector<8x16x10xf32>, vector<8x16x10xf32>, vector<8x16x10xf32>, vector<8x16x10xf32>, vector<8x16x10xf32>, vector<8x16x10xf32> -> vector<8x16x60xf32>
    %45 = vector.shape_cast %44 : vector<8x16x60xf32> to vector<128x60xf32>
    %c1 = arith.constant 1 : index
    %c0_20 = arith.constant 0 : index
    %c0_21 = arith.constant 0 : index
    %46 = vector.load %arg3[%c1, %c0_20, %c0_21] : memref<2x60x32xf32, #tpu.memory_space<vmem>>, vector<1x60x32xf32>
    %47 = vector.shape_cast %46 : vector<1x60x32xf32> to vector<60x32xf32>
    %cst_22 = arith.constant dense<0.000000e+00> : vector<128x32xf32>
    %48 = tpu.matmul %45, %47, %cst_22 {dimension_numbers = #tpu.dot_dimension_numbers<[1], [0], [0], [1], [0, 0, 1, 1], [], []>} : vector<128x60xf32>, vector<60x32xf32>, vector<128x32xf32> -> vector<128x32xf32>
    %49 = vector.shape_cast %48 : vector<128x32xf32> to vector<8x16x32xf32>
    %c0_23 = arith.constant 0 : index
    %c0_24 = arith.constant 0 : index
    %c1_25 = arith.constant 1 : index
    %c0_26 = arith.constant 0 : index
    %c0_27 = arith.constant 0 : index
    %50 = vector.load %arg4[%c0_23, %c0_24, %c1_25, %c0_26, %c0_27] : memref<1x8x2x16x32xf32, #tpu.memory_space<vmem>>, vector<1x8x1x16x32xf32>
    %51 = vector.shape_cast %50 : vector<1x8x1x16x32xf32> to vector<8x16x32xf32>
    %52 = vector.shape_cast %49 : vector<8x16x32xf32> to vector<1x8x1x16x32xf32>
    tpu.vector_store %arg4[%c0_23, %c0_24, %c1_25, %c0_26, %c0_27], %52 {strides = array<i32>} : memref<1x8x2x16x32xf32, #tpu.memory_space<vmem>>, vector<1x8x1x16x32xf32>,
    %cst_28 = arith.constant dense<0.000000e+00> : vector<32xf32>
    %53 = vector.multi_reduction <add>, %48, %cst_28 [0] : vector<128x32xf32> to vector<32xf32>
    %54 = vector.shape_cast %53 : vector<32xf32> to vector<1x32xf32>
    %55 = arith.addf %33, %54 : vector<1x32xf32>
    %56 = arith.mulf %48, %48 : vector<128x32xf32>
    %cst_29 = arith.constant dense<0.000000e+00> : vector<32xf32>
    %57 = vector.multi_reduction <add>, %56, %cst_29 [0] : vector<128x32xf32> to vector<32xf32>
    %58 = vector.shape_cast %57 : vector<32xf32> to vector<1x32xf32>
    %59 = arith.addf %37, %58 : vector<1x32xf32>
    %c0_30 = arith.constant 0 : index
    %c0_31 = arith.constant 0 : index
    %c0_32 = arith.constant 0 : index
    %c0_33 = arith.constant 0 : index
    %60 = vector.load %arg5[%c0_30, %c0_31, %c0_32, %c0_33] : memref<1x1x2x32xf32, #tpu.memory_space<vmem>>, vector<1x1x1x32xf32>
    %61 = vector.shape_cast %60 : vector<1x1x1x32xf32> to vector<1x32xf32>
    %62 = vector.shape_cast %55 : vector<1x32xf32> to vector<1x1x1x32xf32>
    tpu.vector_store %arg5[%c0_30, %c0_31, %c0_32, %c0_33], %62 {strides = array<i32>} : memref<1x1x2x32xf32, #tpu.memory_space<vmem>>, vector<1x1x1x32xf32>,
    %c0_34 = arith.constant 0 : index
    %c0_35 = arith.constant 0 : index
    %c1_36 = arith.constant 1 : index
    %c0_37 = arith.constant 0 : index
    %63 = vector.load %arg5[%c0_34, %c0_35, %c1_36, %c0_37] : memref<1x1x2x32xf32, #tpu.memory_space<vmem>>, vector<1x1x1x32xf32>
    %64 = vector.shape_cast %63 : vector<1x1x1x32xf32> to vector<1x32xf32>
    %65 = vector.shape_cast %59 : vector<1x32xf32> to vector<1x1x1x32xf32>
    tpu.vector_store %arg5[%c0_34, %c0_35, %c1_36, %c0_37], %65 {strides = array<i32>} : memref<1x1x2x32xf32, #tpu.memory_space<vmem>>, vector<1x1x1x32xf32>,
    return
  }
  func.func @transform_0(%arg0: i32, %arg1: i32) -> (i32, i32, i32, i32) {
    %c0_i32 = arith.constant 0 : i32
    %c0_i32_0 = arith.constant 0 : i32
    %c0_i32_1 = arith.constant 0 : i32
    %c0_i32_2 = arith.constant 0 : i32
    return %arg0, %c0_i32, %c0_i32_0, %c0_i32_1 : i32, i32, i32, i32
  }
  func.func @transform_1(%arg0: i32, %arg1: i32) -> (i32, i32, i32) {
    %c0_i32 = arith.constant 0 : i32
    %c0_i32_0 = arith.constant 0 : i32
    %c0_i32_1 = arith.constant 0 : i32
    %c0_i32_2 = arith.constant 0 : i32
    return %c0_i32, %c0_i32_0, %c0_i32_1 : i32, i32, i32
  }
  func.func @transform_2(%arg0: i32, %arg1: i32) -> (i32, i32, i32, i32, i32) {
    %c0_i32 = arith.constant 0 : i32
    %c0_i32_0 = arith.constant 0 : i32
    %c0_i32_1 = arith.constant 0 : i32
    %c0_i32_2 = arith.constant 0 : i32
    return %arg0, %arg1, %c0_i32, %c0_i32_0, %c0_i32_1 : i32, i32, i32, i32, i32
  }
  func.func @transform_3(%arg0: i32, %arg1: i32) -> (i32, i32, i32, i32) {
    %c0_i32 = arith.constant 0 : i32
    %c0_i32_0 = arith.constant 0 : i32
    %c0_i32_1 = arith.constant 0 : i32
    return %arg0, %arg1, %c0_i32, %c0_i32_0 : i32, i32, i32, i32
  }
}

module attributes {stable_mosaic.version = 11 : i64} {
  func.func @_bn_relu_kernel(%arg0: i32, %arg1: i32, %arg2: memref<1x8x2x512xf32, #tpu.memory_space<vmem>>, %arg3: memref<1x512xf32, #tpu.memory_space<vmem>>, %arg4: memref<1x512xf32, #tpu.memory_space<vmem>>, %arg5: memref<1x8x2x512xf32, #tpu.memory_space<vmem>>) attributes {dimension_semantics = [#tpu.dimension_semantics<parallel>, #tpu.dimension_semantics<parallel>], iteration_bounds = array<i64: 2, 2>, scalar_prefetch = 0 : i64, scratch_operands = 0 : i64, tpu.core_type = #tpu.core_type<tc>, window_params = [{transform_indices = @transform_0, window_bounds = array<i64: 1, 8, 2, 512>}, {pipeline_mode = #tpu.pipeline_mode<synchronous>, transform_indices = @transform_1, window_bounds = array<i64: 1, 512>}, {pipeline_mode = #tpu.pipeline_mode<synchronous>, transform_indices = @transform_2, window_bounds = array<i64: 1, 512>}, {transform_indices = @transform_3, window_bounds = array<i64: 1, 8, 2, 512>}]} {
    %c0 = arith.constant 0 : index
    %c0_0 = arith.constant 0 : index
    %c0_1 = arith.constant 0 : index
    %c0_2 = arith.constant 0 : index
    %0 = vector.load %arg2[%c0, %c0_0, %c0_1, %c0_2] : memref<1x8x2x512xf32, #tpu.memory_space<vmem>>, vector<1x8x2x512xf32>
    %c0_3 = arith.constant 0 : index
    %c0_4 = arith.constant 0 : index
    %1 = vector.load %arg3[%c0_3, %c0_4] : memref<1x512xf32, #tpu.memory_space<vmem>>, vector<1x512xf32>
    %2 = vector.shape_cast %1 : vector<1x512xf32> to vector<512xf32>
    %3 = vector.shape_cast %2 : vector<512xf32> to vector<1x1x1x512xf32>
    %4 = vector.broadcast %3 : vector<1x1x1x512xf32> to vector<1x8x2x512xf32>
    %5 = arith.mulf %0, %4 : vector<1x8x2x512xf32>
    %c0_5 = arith.constant 0 : index
    %c0_6 = arith.constant 0 : index
    %6 = vector.load %arg4[%c0_5, %c0_6] : memref<1x512xf32, #tpu.memory_space<vmem>>, vector<1x512xf32>
    %7 = vector.shape_cast %6 : vector<1x512xf32> to vector<512xf32>
    %8 = vector.shape_cast %7 : vector<512xf32> to vector<1x1x1x512xf32>
    %9 = vector.broadcast %8 : vector<1x1x1x512xf32> to vector<1x8x2x512xf32>
    %10 = arith.addf %5, %9 : vector<1x8x2x512xf32>
    %cst = arith.constant 0.000000e+00 : f32
    %11 = vector.broadcast %cst : f32 to vector<1x8x2x512xf32>
    %12 = arith.maximumf %10, %11 : vector<1x8x2x512xf32>
    %c0_7 = arith.constant 0 : index
    %c0_8 = arith.constant 0 : index
    %c0_9 = arith.constant 0 : index
    %c0_10 = arith.constant 0 : index
    %13 = vector.load %arg5[%c0_7, %c0_8, %c0_9, %c0_10] : memref<1x8x2x512xf32, #tpu.memory_space<vmem>>, vector<1x8x2x512xf32>
    tpu.vector_store %arg5[%c0_7, %c0_8, %c0_9, %c0_10], %12 {strides = array<i32>} : memref<1x8x2x512xf32, #tpu.memory_space<vmem>>, vector<1x8x2x512xf32>,
    return
  }
  func.func @transform_0(%arg0: i32, %arg1: i32) -> (i32, i32, i32, i32) {
    %c0_i32 = arith.constant 0 : i32
    %c0_i32_0 = arith.constant 0 : i32
    %c0_i32_1 = arith.constant 0 : i32
    return %arg0, %arg1, %c0_i32, %c0_i32_0 : i32, i32, i32, i32
  }
  func.func @transform_1(%arg0: i32, %arg1: i32) -> (i32, i32) {
    %c0_i32 = arith.constant 0 : i32
    %c0_i32_0 = arith.constant 0 : i32
    %c0_i32_1 = arith.constant 0 : i32
    return %c0_i32, %c0_i32_0 : i32, i32
  }
  func.func @transform_2(%arg0: i32, %arg1: i32) -> (i32, i32) {
    %c0_i32 = arith.constant 0 : i32
    %c0_i32_0 = arith.constant 0 : i32
    %c0_i32_1 = arith.constant 0 : i32
    return %c0_i32, %c0_i32_0 : i32, i32
  }
  func.func @transform_3(%arg0: i32, %arg1: i32) -> (i32, i32, i32, i32) {
    %c0_i32 = arith.constant 0 : i32
    %c0_i32_0 = arith.constant 0 : i32
    %c0_i32_1 = arith.constant 0 : i32
    return %arg0, %arg1, %c0_i32, %c0_i32_0 : i32, i32, i32, i32
  }
}

</mosaic_0001>

<bundles_post_ra>
// kernel: squeeze.0
= control target key start
LH: loop header
LB: loop body
LE: loop exit
PB: predicated region body
PF: predicated region fallthrough
CT: control target
= control target key end

     0   :  { %vm303_vm0 = vcmask 1047556   ;;  %s581_s10 = smov 16   ;;  %vm305_vm1 = vcmask 130048   ;;  %vm374_vm2 = vcmask 261248   ;;  %s858_s0 = inlined_call_operand.vmem [shape: f32[2,3,10,1,2,16], index: 0, kind: input, shape index: {}]   ;;  %s859_s1 = inlined_call_operand.vmem [shape: f32[1,60,32], index: 1, kind: output, shape index: {}]  }
   0x1   :  { %v559_v0 = vld [vmem:[%s858_s0 + $0xe] sm:$0x3]  ;;  %v560_v1 = vld [vmem:[%s858_s0 + $0xc] sm:$0x3]  ;;  %v561_v2 = vld [vmem:[%s858_s0 + $0xa] sm:$0x3] }
   0x2   :  { %269 = vst [vmem:[#allocation0 + $0x38] sm:$0x3] %v559_v0  ;;  %274 = vst [vmem:[#allocation0 + $0x30] sm:$0x3] %v560_v1  ;;  %v562_v3 = vld [vmem:[%s858_s0 + $0x8] sm:$0x3] }
   0x3   :  { %279 = vst [vmem:[#allocation0 + $0x28] sm:$0x3] %v561_v2  ;;  %v563_v4 = vld [vmem:[%s858_s0 + $0x6] sm:$0x3]  ;;  %v564_v5 = vld [vmem:[%s858_s0 + $0x4] sm:$0x3] }
   0x4   :  { %284 = vst [vmem:[#allocation0 + $0x20] sm:$0x3] %v562_v3  ;;  %289 = vst [vmem:[#allocation0 + $0x18] sm:$0x3] %v563_v4  ;;  %v565_v6 = vld [vmem:[%s858_s0 + $0x2] sm:$0x3] }
   0x5   :  { %294 = vst [vmem:[#allocation0 + $0x10] sm:$0x3] %v564_v5  ;;  %v299_v7 = vld [vmem:[%s858_s0] sm:$0x3]  ;;  %298 = vst [vmem:[#allocation0 + $0x8] sm:$0x3] %v565_v6 }
   0x6   :  { %300 = vst [vmem:[#allocation0] sm:$0x3] %v299_v7  ;;  %v551_v8 = vld [vmem:[%s858_s0 + $0x1e] sm:$0x3]  ;;  %v552_v9 = vld [vmem:[%s858_s0 + $0x1c] sm:$0x3] }
   0x7   :  { %v553_v10 = vld [vmem:[%s858_s0 + $0x1a] sm:$0x3]  ;;  %229 = vst [vmem:[#allocation0 + $0x78] sm:$0x3] %v551_v8  ;;  %234 = vst [vmem:[#allocation0 + $0x70] sm:$0x3] %v552_v9 }
   0x8   :  { %239 = vst [vmem:[#allocation0 + $0x68] sm:$0x3] %v553_v10  ;;  %v554_v11 = vld [vmem:[%s858_s0 + $0x18] sm:$0x3]  ;;  %v555_v12 = vld [vmem:[%s858_s0 + $0x16] sm:$0x3] }
   0x9   :  { %v556_v13 = vld [vmem:[%s858_s0 + $0x14] sm:$0x3]  ;;  %244 = vst [vmem:[#allocation0 + $0x60] sm:$0x3] %v554_v11  ;;  %249 = vst [vmem:[#allocation0 + $0x58] sm:$0x3] %v555_v12 }
   0xa   :  { %254 = vst [vmem:[#allocation0 + $0x50] sm:$0x3] %v556_v13  ;;  %v557_v14 = vld [vmem:[%s858_s0 + $0x12] sm:$0x3]  ;;  %v558_v15 = vld [vmem:[%s858_s0 + $0x10] sm:$0x3] }
   0xb   :  { %v527_v16 = vld [vmem:[%s858_s0 + $0x4e] sm:$0x3]  ;;  %259 = vst [vmem:[#allocation0 + $0x48] sm:$0x3] %v557_v14  ;;  %264 = vst [vmem:[#allocation0 + $0x40] sm:$0x3] %v558_v15 }
   0xc   :  { %109 = vst [vmem:[#allocation0 + $0x138] sm:$0x3] %v527_v16  ;;  %v528_v17 = vld [vmem:[%s858_s0 + $0x4c] sm:$0x3]  ;;  %v529_v18 = vld [vmem:[%s858_s0 + $0x4a] sm:$0x3] }
   0xd   :  { %v530_v19 = vld [vmem:[%s858_s0 + $0x48] sm:$0x3]  ;;  %114 = vst [vmem:[#allocation0 + $0x130] sm:$0x3] %v528_v17  ;;  %119 = vst [vmem:[#allocation0 + $0x128] sm:$0x3] %v529_v18 }
   0xe   :  { %124 = vst [vmem:[#allocation0 + $0x120] sm:$0x3] %v530_v19  ;;  %v531_v20 = vld [vmem:[%s858_s0 + $0x46] sm:$0x3]  ;;  %v532_v21 = vld [vmem:[%s858_s0 + $0x44] sm:$0x3] }
   0xf   :  { %v533_v22 = vld [vmem:[%s858_s0 + $0x42] sm:$0x3]  ;;  %129 = vst [vmem:[#allocation0 + $0x118] sm:$0x3] %v531_v20  ;;  %134 = vst [vmem:[#allocation0 + $0x110] sm:$0x3] %v532_v21 }
  0x10   :  { %139 = vst [vmem:[#allocation0 + $0x108] sm:$0x3] %v533_v22  ;;  %v534_v23 = vld [vmem:[%s858_s0 + $0x40] sm:$0x3]  ;;  %v519_v24 = vld [vmem:[%s858_s0 + $0x5e] sm:$0x3] }
  0x11   :  { %v520_v25 = vld [vmem:[%s858_s0 + $0x5c] sm:$0x3]  ;;  %v369_v26 = vld [vmem:[#allocation0 + $0x1] ss:$8 sm:$0xf0]  }
  0x12   :  { %144 = vst [vmem:[#allocation0 + $0x100] sm:$0x3] %v534_v23  ;;  %69 = vst [vmem:[#allocation0 + $0x178] sm:$0x3] %v519_v24  ;;  %v521_v27 = vld [vmem:[%s858_s0 + $0x5a] sm:$0x3] }
  0x13   :  { %74 = vst [vmem:[#allocation0 + $0x170] sm:$0x3] %v520_v25  ;;  %v367_v28 = vld [vmem:[#allocation0 + $0x1] ss:$8 sm:$0xf]  }
  0x14   :  { %79 = vst [vmem:[#allocation0 + $0x168] sm:$0x3] %v521_v27  ;;  %v522_v29 = vld [vmem:[%s858_s0 + $0x58] sm:$0x3]  ;;  %v371_v30 = vsel %vm303_vm0, %v369_v26, %v367_v28  ;;  %v523_v31 = vld [vmem:[%s858_s0 + $0x56] sm:$0x3] }
  0x15   :  { %84 = vst [vmem:[#allocation0 + $0x160] sm:$0x3] %v522_v29  ;;  %v524_v32 = vld [vmem:[%s858_s0 + $0x54] sm:$0x3]  ;;  %v525_v33 = vld [vmem:[%s858_s0 + $0x52] sm:$0x3]  ;;  %372 = vrot.lane.b32.xlu0 %v371_v30, %s581_s10 }
  0x16   :  { %v390_v34 = vld [vmem:[#allocation0 + $0x41] ss:$8 sm:$0xf0]   ;;  %89 = vst [vmem:[#allocation0 + $0x158] sm:$0x3] %v523_v31 }
  0x17   :  { %94 = vst [vmem:[#allocation0 + $0x150] sm:$0x3] %v524_v32  ;;  %99 = vst [vmem:[#allocation0 + $0x148] sm:$0x3] %v525_v33  ;;  %v526_v35 = vld [vmem:[%s858_s0 + $0x50] sm:$0x3] }
  0x18   :  { %v388_v36 = vld [vmem:[#allocation0 + $0x41] ss:$8 sm:$0xf]   ;;  %104 = vst [vmem:[#allocation0 + $0x140] sm:$0x3] %v526_v35 }
  0x19   :  { %v543_v37 = vld [vmem:[%s858_s0 + $0x2e] sm:$0x3]  ;;  %v392_v38 = vsel %vm303_vm0, %v390_v34, %v388_v36  ;;  %v379_v39 = vld [vmem:[#allocation0 + $0x101] ss:$8 sm:$0xf0]  }
  0x1a   :  { %189 = vst [vmem:[#allocation0 + $0xb8] sm:$0x3] %v543_v37  ;;  %v544_v40 = vld [vmem:[%s858_s0 + $0x2c] sm:$0x3]  ;;  %393 = vrot.lane.b32.xlu1 %v392_v38, %s581_s10  ;;  %v545_v41 = vld [vmem:[%s858_s0 + $0x2a] sm:$0x3] }
  0x1b   :  { %194 = vst [vmem:[#allocation0 + $0xb0] sm:$0x3] %v544_v40  ;;  %v546_v42 = vld [vmem:[%s858_s0 + $0x28] sm:$0x3]  ;;  %v547_v43 = vld [vmem:[%s858_s0 + $0x26] sm:$0x3] }
  0x1c   :  { %v377_v44 = vld [vmem:[#allocation0 + $0x101] ss:$8 sm:$0xf]   ;;  %199 = vst [vmem:[#allocation0 + $0xa8] sm:$0x3] %v545_v41 }
  0x1d   :  { %204 = vst [vmem:[#allocation0 + $0xa0] sm:$0x3] %v546_v42  ;;  %209 = vst [vmem:[#allocation0 + $0x98] sm:$0x3] %v547_v43  ;;  %v548_v45 = vld [vmem:[%s858_s0 + $0x24] sm:$0x3]  ;;  %v381_v46 = vsel %vm303_vm0, %v379_v39, %v377_v44 }
  0x1e   :  { %214 = vst [vmem:[#allocation0 + $0x90] sm:$0x3] %v548_v45  ;;  %v549_v47 = vld [vmem:[%s858_s0 + $0x22] sm:$0x3]  ;;  %v550_v48 = vld [vmem:[%s858_s0 + $0x20] sm:$0x3]  ;;  %382 = vrot.lane.b32.xlu0 %v381_v46, %s581_s10 }
  0x1f   :  { %v511_v49 = vld [vmem:[%s858_s0 + $0x6e] sm:$0x3]  ;;  %v401_v50 = vld [vmem:[#allocation0 + $0x141] ss:$8 sm:$0xf0]  }
  0x20   :  { %219 = vst [vmem:[#allocation0 + $0x88] sm:$0x3] %v549_v47  ;;  %224 = vst [vmem:[#allocation0 + $0x80] sm:$0x3] %v550_v48  ;;  %v512_v51 = vld [vmem:[%s858_s0 + $0x6c] sm:$0x3] }
  0x21   :  { %29 = vst [vmem:[#allocation0 + $0x1b8] sm:$0x3] %v511_v49  ;;  %34 = vst [vmem:[#allocation0 + $0x1b0] sm:$0x3] %v512_v51  ;;  %v513_v52 = vld [vmem:[%s858_s0 + $0x6a] sm:$0x3] }
  0x22   :  { %v514_v53 = vld [vmem:[%s858_s0 + $0x68] sm:$0x3]  ;;  %v515_v54 = vld [vmem:[%s858_s0 + $0x66] sm:$0x3]  ;;  %39 = vst [vmem:[#allocation0 + $0x1a8] sm:$0x3] %v513_v52 }
  0x23   :  { %v399_v55 = vld [vmem:[#allocation0 + $0x141] ss:$8 sm:$0xf]   ;;  %44 = vst [vmem:[#allocation0 + $0x1a0] sm:$0x3] %v514_v53 }
  0x24   :  { %49 = vst [vmem:[#allocation0 + $0x198] sm:$0x3] %v515_v54  ;;  %v516_v56 = vld [vmem:[%s858_s0 + $0x64] sm:$0x3]  ;;  %v403_v57 = vsel %vm303_vm0, %v401_v50, %v399_v55  ;;  %v517_v58 = vld [vmem:[%s858_s0 + $0x62] sm:$0x3] }
  0x25   :  { %54 = vst [vmem:[#allocation0 + $0x190] sm:$0x3] %v516_v56  ;;  %v518_v59 = vld [vmem:[%s858_s0 + $0x60] sm:$0x3]  ;;  %v535_v60 = vld [vmem:[%s858_s0 + $0x3e] sm:$0x3]  ;;  %404 = vrot.lane.b32.xlu1 %v403_v57, %s581_s10 }
  0x26   :  { %59 = vst [vmem:[#allocation0 + $0x188] sm:$0x3] %v517_v58  ;;  %64 = vst [vmem:[#allocation0 + $0x180] sm:$0x3] %v518_v59  ;;  %v536_v61 = vld [vmem:[%s858_s0 + $0x3c] sm:$0x3] }
  0x27   :  { %149 = vst [vmem:[#allocation0 + $0xf8] sm:$0x3] %v535_v60  ;;  %v537_v62 = vld [vmem:[%s858_s0 + $0x3a] sm:$0x3]  ;;  %v538_v63 = vld [vmem:[%s858_s0 + $0x38] sm:$0x3] }
  0x28   :  { %v412_v0 = vld [vmem:[#allocation0 + $0x81] ss:$8 sm:$0xf0]   ;;  %154 = vst [vmem:[#allocation0 + $0xf0] sm:$0x3] %v536_v61 }
  0x29   :  { %159 = vst [vmem:[#allocation0 + $0xe8] sm:$0x3] %v537_v62  ;;  %164 = vst [vmem:[#allocation0 + $0xe0] sm:$0x3] %v538_v63  ;;  %v539_v1 = vld [vmem:[%s858_s0 + $0x36] sm:$0x3] }
  0x2a   :  { %169 = vst [vmem:[#allocation0 + $0xd8] sm:$0x3] %v539_v1  ;;  %v540_v2 = vld [vmem:[%s858_s0 + $0x34] sm:$0x3]  ;;  %v541_v3 = vld [vmem:[%s858_s0 + $0x32] sm:$0x3] }
  0x2b   :  { %v542_v4 = vld [vmem:[%s858_s0 + $0x30] sm:$0x3]  ;;  %174 = vst [vmem:[#allocation0 + $0xd0] sm:$0x3] %v540_v2  ;;  %179 = vst [vmem:[#allocation0 + $0xc8] sm:$0x3] %v541_v3 }
  0x2c   :  { %v410_v5 = vld [vmem:[#allocation0 + $0x81] ss:$8 sm:$0xf]   ;;  %184 = vst [vmem:[#allocation0 + $0xc0] sm:$0x3] %v542_v4 }
  0x2d   :  { %v507_v6 = vld [vmem:[%s858_s0 + $0x76] sm:$0x3]  ;;  %v414_v7 = vsel %vm303_vm0, %v412_v0, %v410_v5  ;;  %v508_v8 = vld [vmem:[%s858_s0 + $0x74] sm:$0x3]  ;;  %v509_v9 = vld [vmem:[%s858_s0 + $0x72] sm:$0x3] }
  0x2e   :  { %9 = vst [vmem:[#allocation0 + $0x1d8] sm:$0x3] %v507_v6  ;;  %v510_v10 = vld [vmem:[%s858_s0 + $0x70] sm:$0x3]  ;;  %415 = vrot.lane.b32.xlu0 %v414_v7, %s581_s10  ;;  %14 = vst [vmem:[#allocation0 + $0x1d0] sm:$0x3] %v508_v8 }
  0x2f   :  { %v423_v11 = vld [vmem:[#allocation0 + $0x181] ss:$8 sm:$0xf0]   ;;  %19 = vst [vmem:[#allocation0 + $0x1c8] sm:$0x3] %v509_v9 }
  0x30   :  { %24 = vst [vmem:[#allocation0 + $0x1c0] sm:$0x3] %v510_v10  ;;  %v301_v12 = vld [vmem:[#allocation0] ss:$8 sm:$0xf]  }
  0x31   :  { %v302_v13 = vld [vmem:[#allocation0] ss:$8 sm:$0xf0]   ;;  %v421_v15 = vld [vmem:[#allocation0 + $0x181] ss:$8 sm:$0xf]  }
  0x32   :  { %v308_v14 = vld [vmem:[#allocation0 + $0x40] ss:$8 sm:$0xf]   ;;  %v304_v16 = vsel %vm303_vm0, %v302_v13, %v301_v12  ;;  %v425_v18 = vsel %vm303_vm0, %v423_v11, %v421_v15  ;;  %v434_v19 = vld [vmem:[#allocation0 + $0xc1] ss:$8 sm:$0xf0]  }
  0x33   :  { %v310_v17 = vld [vmem:[#allocation0 + $0x40] ss:$8 sm:$0xf0]   ;;  %306 = vst.msk [vmem:[%s859_s1] sm:$0xff] %vm305_vm1, %v304_v16   ;;  %426 = vrot.lane.b32.xlu1 %v425_v18, %s581_s10 }
  0x34   :  { %v312_v20 = vsel %vm303_vm0, %v310_v17, %v308_v14  ;;  %v335_v21 = vld [vmem:[#allocation0 + $0x100] ss:$8 sm:$0xf]   ;;  %v432_v24 = vld [vmem:[#allocation0 + $0xc1] ss:$8 sm:$0xf]  }
  0x35   :  { %566 = vst.msk [vmem:[%s859_s1 + $0x8] sm:$0xff] %vm305_vm1, %v312_v20   ;;  %v337_v22 = vld [vmem:[#allocation0 + $0x100] ss:$8 sm:$0xf0]   ;;  %v436_v27 = vsel %vm303_vm0, %v434_v19, %v432_v24 }
  0x36   :  { %v344_v23 = vld [vmem:[#allocation0 + $0x140] ss:$8 sm:$0xf]   ;;  %v339_v25 = vsel %vm303_vm0, %v337_v22, %v335_v21  ;;  %437 = vrot.lane.b32.xlu0 %v436_v27, %s581_s10 }
  0x37   :  { %v346_v26 = vld [vmem:[#allocation0 + $0x140] ss:$8 sm:$0xf0]   ;;  %569 = vst.msk [vmem:[%s859_s1 + $0x20] sm:$0xff] %vm305_vm1, %v339_v25  }
  0x38   :  { %v348_v28 = vsel %vm303_vm0, %v346_v26, %v344_v23  ;;  %v317_v29 = vld [vmem:[#allocation0 + $0x80] ss:$8 sm:$0xf]   ;;  %v443_v31 = vld [vmem:[#allocation0 + $0x1c1] ss:$8 sm:$0xf]  }
  0x39   :  { %v319_v30 = vld [vmem:[#allocation0 + $0x80] ss:$8 sm:$0xf0]   ;;  %570 = vst.msk [vmem:[%s859_s1 + $0x28] sm:$0xff] %vm305_vm1, %v348_v28   ;;  %444 = vrot.lane.b32.xlu1 %v443_v31, %s581_s10 }
  0x3a   :  { %v321_v32 = vsel %vm303_vm0, %v319_v30, %v317_v29  ;;  %v353_v33 = vld [vmem:[#allocation0 + $0x180] ss:$8 sm:$0xf]  }
  0x3b   :  { %567 = vst.msk [vmem:[%s859_s1 + $0x10] sm:$0xff] %vm305_vm1, %v321_v32   ;;  %v355_v34 = vld [vmem:[#allocation0 + $0x180] ss:$8 sm:$0xf0]  }
  0x3c   :  { %v326_v35 = vld [vmem:[#allocation0 + $0xc0] ss:$8 sm:$0xf]   ;;  %v357_v36 = vsel %vm303_vm0, %v355_v34, %v353_v33 }
  0x3d   :  { %v328_v37 = vld [vmem:[#allocation0 + $0xc0] ss:$8 sm:$0xf0]   ;;  %571 = vst.msk [vmem:[%s859_s1 + $0x30] sm:$0xff] %vm305_vm1, %v357_v36  }
  0x3e   :  { %v362_v38 = vld [vmem:[#allocation0 + $0x1c0] ss:$8 sm:$0xf]   ;;  %v330_v39 = vsel %vm303_vm0, %v328_v37, %v326_v35 }
  0x3f   :  { %572 = vst.msk [vmem:[%s859_s1 + $0x38] sm:$0xf] %vm305_vm1, %v362_v38   ;;  %568 = vst.msk [vmem:[%s859_s1 + $0x18] sm:$0xff] %vm305_vm1, %v330_v39  }
  0x87   :  { %v373_v40 = vpop.permute.xlu0 %372  }
  0x88   :  { %375 = vst.msk [vmem:[%s859_s1] sm:$0xff] %vm374_vm2, %v373_v40  }
  0x8c   :  { %v394_v41 = vpop.permute.xlu1 %393  }
  0x8d   :  { %574 = vst.msk [vmem:[%s859_s1 + $0x8] sm:$0xff] %vm374_vm2, %v394_v41  }
  0x90   :  { %v383_v42 = vpop.permute.xlu0 %382  }
  0x91   :  { %573 = vst.msk [vmem:[%s859_s1 + $0x20] sm:$0xff] %vm374_vm2, %v383_v42  }
  0x97   :  { %v405_v43 = vpop.permute.xlu1 %404  }
  0x98   :  { %575 = vst.msk [vmem:[%s859_s1 + $0x28] sm:$0xff] %vm374_vm2, %v405_v43  }
  0xa0   :  { %v416_v44 = vpop.permute.xlu0 %415  }
  0xa1   :  { %576 = vst.msk [vmem:[%s859_s1 + $0x10] sm:$0xff] %vm374_vm2, %v416_v44  }
  0xa5   :  { %v427_v45 = vpop.permute.xlu1 %426  }
  0xa6   :  { %577 = vst.msk [vmem:[%s859_s1 + $0x30] sm:$0xff] %vm374_vm2, %v427_v45  }
  0xa8   :  { %v438_v46 = vpop.permute.xlu0 %437  }
  0xa9   :  { %578 = vst.msk [vmem:[%s859_s1 + $0x18] sm:$0xff] %vm374_vm2, %v438_v46  }
  0xab   :  { %v445_v47 = vpop.permute.xlu1 %444  }
  0xac   :  { %579 = vst.msk [vmem:[%s859_s1 + $0x38] sm:$0xf] %vm374_vm2, %v445_v47  }

// kernel: tile.18
= control target key start
LH: loop header
LB: loop body
LE: loop exit
PB: predicated region body
PF: predicated region fallthrough
CT: control target
= control target key end

     0   :  { %s40_s0 = inlined_call_operand.vmem [shape: f32[16], index: 0, kind: input, shape index: {}]   ;;  %s41_s1 = inlined_call_operand.vmem [shape: f32[32,16], index: 1, kind: output, shape index: {}]  }
   0x1   :  { %v4_v0 = vld [vmem:[%s40_s0] ss:$0 sm:$0xff] }
   0x2   :  { %5 = vst [vmem:[%s41_s1] sm:$0xff] %v4_v0  ;;  %12 = vst [vmem:[%s41_s1 + $0x8] sm:$0xff] %v4_v0 }
   0x3   :  { %13 = vst [vmem:[%s41_s1 + $0x10] sm:$0xff] %v4_v0  ;;  %14 = vst [vmem:[%s41_s1 + $0x18] sm:$0xff] %v4_v0 }

// kernel: tile.19
= control target key start
LH: loop header
LB: loop body
LE: loop exit
PB: predicated region body
PF: predicated region fallthrough
CT: control target
= control target key end

     0   :  { %s94_s8 = smov 112   ;;  %s95_s11 = smov 80   ;;  %vm3_vm0 = vcmask 130048   ;;  %vm9_vm1 = vcmask 1048448   ;;  %vm15_vm2 = vcmask 917248   ;;  %vm21_vm3 = vcmask 786048   ;;  %s147_s0 = inlined_call_operand.vmem [shape: f32[32,16], index: 0, kind: input, shape index: {}]   ;;  %s148_s1 = inlined_call_operand.vmem [shape: f32[1,512], index: 1, kind: output, shape index: {}]  }
   0x1   :  { %v77_v0 = vld [vmem:[%s147_s0 + $0x7] ss:$8 sm:$0xf]   ;;  %v79_v1 = vld [vmem:[%s147_s0 + $0x5] ss:$8 sm:$0xf]  }
   0x2   :  { %7 = vrot.lane.b32.xlu0 %v77_v0, %s94_s8  ;;  %19 = vrot.lane.b32.xlu1 %v79_v1, %s95_s11  ;;  %v78_v2 = vld [vmem:[%s147_s0 + $0x6] ss:$8 sm:$0xf]   ;;  %v80_v3 = vld [vmem:[%s147_s0 + $0x4] ss:$8 sm:$0xf]  }
   0x3   :  { %s96_s16 = smov 96   ;;  %v2_v4 = vld [vmem:[%s147_s0] ss:$8 sm:$0xf]   ;;  %s97_s19 = smov 64   ;;  %vm27_vm4 = vcmask 654848  }
   0x4   :  { %v81_v5 = vld [vmem:[%s147_s0 + $0x3] ss:$8 sm:$0xf]   ;;  %4 = vst.msk [vmem:[#allocation0] ss:$8 sm:$0xf] %vm3_vm0, %v2_v4  }
   0x5   :  { %v82_v6 = vld [vmem:[%s147_s0 + $0x2] ss:$8 sm:$0xf]   ;;  %s98_s24 = smov 48   ;;  %s99_s25 = smov 32   ;;  %vm33_vm5 = vcmask 523648  }
   0x6   :  { %13 = vrot.lane.b32.xlu0 %v78_v2, %s96_s16  ;;  %25 = vrot.lane.b32.xlu1 %v80_v3, %s97_s19  ;;  %v83_v7 = vld [vmem:[%s147_s0 + $0x1] ss:$8 sm:$0xf]   ;;  %s100_s0 = smov 16   ;;  %vm39_vm6 = vcmask 392448   ;;  %vm45_vm7 = vcmask 261248  }
   0xa   :  { %31 = vrot.lane.b32.xlu0 %v81_v5, %s98_s24  ;;  %37 = vrot.lane.b32.xlu1 %v82_v6, %s99_s25 }
   0xe   :  { %43 = vrot.lane.b32.xlu0 %v83_v7, %s100_s0 }
  0x74   :  { %v8_v8 = vpop.permute.xlu0 %7   ;;  %v20_v9 = vpop.permute.xlu1 %19  }
  0x75   :  { %10 = vst.msk [vmem:[#allocation0] ss:$8 sm:$0xf] %vm9_vm1, %v8_v8  }
  0x78   :  { %v14_v10 = vpop.permute.xlu0 %13   ;;  %v26_v11 = vpop.permute.xlu1 %25  }
  0x79   :  { %16 = vst.msk [vmem:[#allocation0] ss:$8 sm:$0xf] %vm15_vm2, %v14_v10  }
  0x7a   :  { %22 = vst.msk [vmem:[#allocation0] ss:$8 sm:$0xf] %vm21_vm3, %v20_v9  }
  0x7b   :  { %28 = vst.msk [vmem:[#allocation0] ss:$8 sm:$0xf] %vm27_vm4, %v26_v11  }
  0x7c   :  { %v32_v12 = vpop.permute.xlu0 %31   ;;  %v38_v13 = vpop.permute.xlu1 %37  }
  0x7d   :  { %34 = vst.msk [vmem:[#allocation0] ss:$8 sm:$0xf] %vm33_vm5, %v32_v12  }
  0x7e   :  { %40 = vst.msk [vmem:[#allocation0] ss:$8 sm:$0xf] %vm39_vm6, %v38_v13  }
  0x80   :  { %v44_v14 = vpop.permute.xlu0 %43  }
  0x81   :  { %46 = vst.msk [vmem:[#allocation0] ss:$8 sm:$0xf] %vm45_vm7, %v44_v14  }
  0x88   :  { %v51_v15 = vld [vmem:[#allocation0] sm:$0x1]  ;;  %v56_v16 = vld [vmem:[#allocation0 + $0x8] sm:$0x1]  ;;  %v62_v17 = vld [vmem:[#allocation0 + $0x10] sm:$0x1] }
  0x89   :  { %54 = vst [vmem:[%s148_s1] sm:$0x1] %v51_v15  ;;  %84 = vst [vmem:[%s148_s1 + $0x1] sm:$0x1] %v56_v16  ;;  %v69_v18 = vld [vmem:[#allocation0 + $0x18] sm:$0x1] }
  0x8a   :  { %85 = vst [vmem:[%s148_s1 + $0x2] sm:$0x1] %v62_v17  ;;  %86 = vst [vmem:[%s148_s1 + $0x3] sm:$0x1] %v69_v18 }

// kernel: up_forward.3
= control target key start
LH: loop header
LB: loop body
LE: loop exit
PB: predicated region body
PF: predicated region fallthrough
CT: control target
= control target key end

     0   :  { %s543_s12 = smov 0   ;;  %s545_s13 = smov 0   ;;  %s607_s0 = inlined_call_operand.vmem [shape: f32[2,16,2,512], index: 0, kind: input, shape index: {}]   ;;  %s608_s1 = inlined_call_operand.vmem [shape: f32[1,512], index: 1, kind: input, shape index: {}]   ;;  %s609_s2 = inlined_call_operand.vmem [shape: f32[1,512], index: 2, kind: input, shape index: {}]   ;;  %s610_s3 = inlined_call_operand.vmem [shape: f32[2,16,2,512], index: 3, kind: output, shape index: {}]  }
   0x1   :  { %s547_s14 = smov 0   ;;  %s549_s15 = smov 0  }
   0x2   :  { %s551_s16 = smov 0  }
   0x3 LB: > { %s22_s17 = sadd.s32 1, %s512_s14  ;;  %s25_s18 = sadd.s32 1, %s516_s15  ;;  %s520_s16 = sphi %s551_s16, %s13_s16   ;;  %s516_s15 = sphi %s549_s15, %s614_s15   ;;  %s512_s14 = sphi %s547_s14, %s613_s14   ;;  %s508_s13 = sphi %s545_s13, %s612_s13   ;;  %s504_s12 = sphi %s543_s12, %s611_s12  }
   0x4   : > { %p23_p0 = scmp.ge.s32.totalorder %s22_s17, 2  ;;  %p430_p1 = scmp.ge.s32.totalorder %s520_s16, 1 }
   0x5   : > { %p159_p2 = scmp.lt.s32.totalorder %s520_s16, 5 }
   0x6   : > { %s616_s17 = smov (%p23_p0, %s22_s17), 0  ;;  %s618_s18 = smov (!%p23_p0, %s25_s18), %s516_s15 }
   0x7   : > { %p160_p3 = pnand %p430_p1, %p159_p2  ;;  %p27_p4 = scmp.ge.s32.totalorder %s618_s18, 2 }
   0x8   : > { %s431_s19 = sshll.u32 (!%p160_p3), %s504_s12, 3  ;;  %p194_p5 = scmp.lt.s32.totalorder (!%p160_p3), %s508_s13, 1 }
   0x9   : > { %s620_s18 = smov (%p27_p4, %s618_s18), 0  ;;  %163 = sbr.rel (%p160_p3) target bundleno = 38 (0x26), region = 32 }
   0xa   : > { %p196_p6 = scmp.lt.s32.totalorder (!%p160_p3), %s431_s19, 15 }
   0xe   : > { %v225_v0 = vlaneseq  ;;  %v522_v1 = vmov 1983009808   ;;  %s622_s13 = smov (!%p194_p5, %s508_s13), 1  ;;  %s624_s19 = smov (!%p196_p6, %s431_s19), 15  ;;  %v223_v4 = vld [vmem:[%s608_s1] sm:$0xf] }
   0xf   : > { %v244_v2 = vunpack.c.l.s4 %v522_v1  ;;  %v267_v6 = vld [vmem:[%s609_s2] sm:$0xf]  ;;  %s433_s24 = sshll.u32 %s622_s13, 6  ;;  %s432_s25 = sshll.u32 %s624_s19, 2 }
  0x10   : > { %v226_v3 = vshrl.u32 %v225_v0, 7  ;;  %s579_s26 = sadd.s32 %s433_s24, %s432_s25 }
  0x11   : > { %v245_v5 = vunpack.c.0.s8 %v244_v2  ;;  %s434_s27 = sshll.u32 %s579_s26, 1 }
  0x12   : > { %v227_v7 = vsub.s32 0, %v226_v3  ;;  %v231_v8 = vsub.s32 1, %v226_v3  ;;  %v235_v9 = vsub.s32 2, %v226_v3  ;;  %v239_v10 = vsub.s32 3, %v226_v3  ;;  %s202_s30 = scalar_lea.vmem %s607_s0, %s434_s27  ;;  %s213_s6 = scalar_lea.vmem %s610_s3, %s434_s27 }
  0x13   : > { %v248_v11 = vsub.s32 %v245_v5, %v226_v3  ;;  %v215_v24 = vld [vmem:[%s202_s30] sm:$0xff]  ;;  %v216_v27 = vld [vmem:[%s202_s30 + $0x8] sm:$0xff]  ;;  %v217_v30 = vld [vmem:[%s202_s30 + $0x10] sm:$0xff] }
  0x14   : > { %v228_v12 = vrot.slane %v223_v4, %v227_v7  ;;  %v232_v13 = vrot.slane %v223_v4, %v231_v8  ;;  %v236_v14 = vrot.slane %v223_v4, %v235_v9  ;;  %v240_v15 = vrot.slane %v223_v4, %v239_v10  ;;  %v218_v31 = vld [vmem:[%s202_s30 + $0x18] sm:$0xff]  ;;  %v219_v32 = vld [vmem:[%s202_s30 + $0x20] sm:$0xff]  ;;  %v220_v34 = vld [vmem:[%s202_s30 + $0x28] sm:$0xff] }
  0x15   : > { %v272_v16 = vrot.slane %v267_v6, %v227_v7  ;;  %v276_v17 = vrot.slane %v267_v6, %v231_v8  ;;  %v280_v18 = vrot.slane %v267_v6, %v235_v9  ;;  %v284_v19 = vrot.slane %v267_v6, %v239_v10  ;;  %v221_v35 = vld [vmem:[%s202_s30 + $0x30] sm:$0xff]  ;;  %v222_v36 = vld [vmem:[%s202_s30 + $0x38] sm:$0xff] }
  0x16   : > { %v241_v20 = vcombine.low %v228_v12, %v232_v13  ;;  %v242_v21 = vcombine.low %v236_v14, %v240_v15 }
  0x17   : > { %v285_v22 = vcombine.low %v272_v16, %v276_v17  ;;  %v286_v23 = vcombine.low %v280_v18, %v284_v19 }
  0x18   : > { %v249_v25 = vrot.slane %v241_v20, %v248_v11  ;;  %v256_v26 = vrot.slane %v242_v21, %v248_v11 }
  0x19   : > { %v293_v28 = vrot.slane %v285_v22, %v248_v11  ;;  %v300_v29 = vrot.slane %v286_v23, %v248_v11 }
  0x1a   : > { %v257_v33 = vcombine.low %v249_v25, %v256_v26 }
  0x1b   : > { %v301_v37 = vcombine.low %v293_v28, %v300_v29 }
  0x1c   : > { %v259_v38 = vmul.f32 %v257_v33, %v215_v24  ;;  %v260_v39 = vmul.f32 %v257_v33, %v216_v27  ;;  %v261_v40 = vmul.f32 %v257_v33, %v217_v30  ;;  %v262_v41 = vmul.f32 %v257_v33, %v218_v31 }
  0x1d   : > { %v263_v42 = vmul.f32 %v257_v33, %v219_v32  ;;  %v264_v43 = vmul.f32 %v257_v33, %v220_v34  ;;  %v265_v44 = vmul.f32 %v257_v33, %v221_v35  ;;  %v266_v45 = vmul.f32 %v257_v33, %v222_v36 }
  0x1e   : > { %v303_v46 = vadd.f32 %v301_v37, %v259_v38  ;;  %v304_v47 = vadd.f32 %v301_v37, %v260_v39  ;;  %v305_v48 = vadd.f32 %v301_v37, %v261_v40  ;;  %v306_v49 = vadd.f32 %v301_v37, %v262_v41 }
  0x1f   : > { %v307_v50 = vadd.f32 %v301_v37, %v263_v42  ;;  %v308_v51 = vadd.f32 %v301_v37, %v264_v43  ;;  %v309_v52 = vadd.f32 %v301_v37, %v265_v44  ;;  %v310_v53 = vadd.f32 %v301_v37, %v266_v45 }
  0x20   : > { %v311_v54 = vmax.f32 %v303_v46, 0.0  ;;  %v312_v55 = vmax.f32 %v304_v47, 0.0  ;;  %v313_v56 = vmax.f32 %v305_v48, 0.0  ;;  %v314_v57 = vmax.f32 %v306_v49, 0.0 }
  0x21   : > { %v315_v58 = vmax.f32 %v307_v50, 0.0  ;;  %v316_v59 = vmax.f32 %v308_v51, 0.0  ;;  %v317_v60 = vmax.f32 %v309_v52, 0.0  ;;  %v318_v61 = vmax.f32 %v310_v53, 0.0 }
  0x22   : > { %319 = vst [vmem:[%s213_s6] sm:$0xff] %v311_v54  ;;  %320 = vst [vmem:[%s213_s6 + $0x8] sm:$0xff] %v312_v55 }
  0x23   : > { %321 = vst [vmem:[%s213_s6 + $0x10] sm:$0xff] %v313_v56  ;;  %322 = vst [vmem:[%s213_s6 + $0x18] sm:$0xff] %v314_v57 }
  0x24   : > { %323 = vst [vmem:[%s213_s6 + $0x20] sm:$0xff] %v315_v58  ;;  %324 = vst [vmem:[%s213_s6 + $0x28] sm:$0xff] %v316_v59 }
  0x25   : > { %325 = vst [vmem:[%s213_s6 + $0x30] sm:$0xff] %v317_v60  ;;  %326 = vst [vmem:[%s213_s6 + $0x38] sm:$0xff] %v318_v61 }
  0x26 PF: > { %s13_s16 = sadd.s32 1, %s520_s16   ;;  %s611_s12 = smov %s512_s14 }
  0x27   : > { %p10_p7 = scmp.ge.s32.totalorder %s13_s16, 6   ;;  %s612_s13 = smov %s516_s15 }
  0x28   : > { %s613_s14 = smov %s616_s17  ;;  %s614_s15 = smov %s620_s18 }
  0x29   :  { %12 = sbr.rel (!%p10_p7) target bundleno = 3 (0x3), region = 62 }

// kernel: up_forward.2
= control target key start
LH: loop header
LB: loop body
LE: loop exit
PB: predicated region body
PF: predicated region fallthrough
CT: control target
= control target key end

     0   :  { %s2401_s12 = smov 0   ;;  %s2403_s13 = smov 0   ;;  %s3524_s0 = inlined_call_operand.vmem [shape: f32[2,18,18,10], index: 0, kind: input, shape index: {}]   ;;  %s3525_s1 = inlined_call_operand.vmem [shape: f32[2,60,32], index: 1, kind: input, shape index: {}]   ;;  %s3526_s2 = inlined_call_operand.vmem [shape: f32[2,16,2,16,32], index: 2, kind: output, shape index: {0}]   ;;  %s3527_s3 = inlined_call_operand.vmem [shape: f32[2,2,2,32], index: 3, kind: output, shape index: {1}]  }
   0x1   :  { %s2405_s14 = smov 0   ;;  %s2407_s15 = smov 0  }
   0x2   :  { %s2409_s16 = smov 0  }
   0x3 LB: > { %s23_s17 = sadd.s32 1, %s2366_s14  ;;  %s26_s18 = sadd.s32 1, %s2370_s15  ;;  %s2374_s16 = sphi %s2409_s16, %s14_s16   ;;  %s2370_s15 = sphi %s2407_s15, %s3531_s15   ;;  %s2366_s14 = sphi %s2405_s14, %s3530_s14   ;;  %s2362_s13 = sphi %s2403_s13, %s3529_s13   ;;  %s2358_s12 = sphi %s2401_s12, %s3528_s12  }
   0x4   : > { %p24_p0 = scmp.ge.s32.totalorder %s23_s17, 2  ;;  %p2040_p1 = scmp.ge.s32.totalorder %s2374_s16, 1 }
   0x5   : > { %p156_p2 = scmp.lt.s32.totalorder %s2374_s16, 5 }
   0x6   : > { %s3533_s17 = smov (%p24_p0, %s23_s17), 0  ;;  %s3535_s18 = smov (!%p24_p0, %s26_s18), %s2370_s15 }
   0x7   : > { %p157_p3 = pnand %p2040_p1, %p156_p2  ;;  %p28_p4 = scmp.ge.s32.totalorder %s3535_s18, 2 }
   0x8   : > { %p193_p5 = scmp.lt.s32.totalorder (!%p157_p3), %s2362_s13, 1  ;;  %s2049_s19 = smul.u32 (!%p157_p3), 192, %s2358_s12 }
   0x9   : > { %s3537_s18 = smov (%p28_p4, %s3535_s18), 0  ;;  %160 = sbr.rel (%p157_p3) target bundleno = 673 (0x2a1), region = 28 }
   0xa   : > { %s2376_s25 = smov (!%p157_p3), 10   ;;  %s2377_s26 = smov (!%p157_p3), 20  }
   0xb   : > { %s2378_s27 = smov (!%p157_p3), 30   ;;  %p211_p7 = scmp.lt.s32.totalorder (!%p157_p3), %s2358_s12, 1 }
   0xe   : > { %s3539_s13 = smov (!%p193_p5, %s2362_s13), 1  ;;  %vm322_vm0 = vcmask 1046528   ;;  %vm411_vm1 = vcmask 1045504   ;;  %v840_v36 = vld [vmem:[%s3525_s1 + $0x38] sm:$0xf]  ;;  %vm890_vm2 = vcmask 1043456  }
   0xf   : > { %s2290_s20 = smul.u32 432, %s3539_s13  ;;  %2210 = vmatprep.subr.msk.mxu0 %vm890_vm2, %v840_v36  ;;  %v839_v37 = vld [vmem:[%s3525_s1 + $0x30] sm:$0xff]  ;;  %v838_v39 = vld [vmem:[%s3525_s1 + $0x28] sm:$0xff]  ;;  %v2126_v40 = vld [vmem:[%s3525_s1 + $0x78] sm:$0xf]  ;;  %vm748_vm3 = vcmask 80896  }
  0x10   : > { %2211 = vmatpush3.msk.msra.mxu0 %vm890_vm2, %v840_v36  ;;  %v837_v41 = vld [vmem:[%s3525_s1 + $0x20] sm:$0xff]  ;;  %v2125_v42 = vld [vmem:[%s3525_s1 + $0x70] sm:$0xff]  ;;  %2250 = vmatprep.subr.msk.mxu1 %vm890_vm2, %v2126_v40  ;;  %v836_v43 = vld [vmem:[%s3525_s1 + $0x18] sm:$0xff]  ;;  %vm765_vm4 = vcmask 162816   ;;  %vm782_vm5 = vcmask 244736   ;;  %vm799_vm6 = vcmask 326656  }
  0x11   : > { %s197_s23 = scalar_lea.vmem %s3524_s0, %s2290_s20  ;;  %2212 = vmatprep.subr.mxu0 %v839_v37  ;;  %2251 = vmatpush3.msk.msra.mxu1 %vm890_vm2, %v2126_v40  ;;  %s2379_s20 = smov 40   ;;  %v2124_v44 = vld [vmem:[%s3525_s1 + $0x68] sm:$0xff]  ;;  %v835_v46 = vld [vmem:[%s3525_s1 + $0x10] sm:$0xff]  ;;  %v2123_v47 = vld [vmem:[%s3525_s1 + $0x60] sm:$0xff]  ;;  %vm816_vm7 = vcmask 408576   ;;  %vm841_vm8 = vcmask 490496  }
  0x12   : > { %s2440_s24 = scalar_lea.vmem %s197_s23, %s2049_s19  ;;  %2213 = vmatpush3.msra.mxu0 %v839_v37  ;;  %2252 = vmatprep.subr.mxu1 %v2125_v42  ;;  %v834_v48 = vld [vmem:[%s3525_s1 + $0x8] sm:$0xff]  ;;  %v2122_v50 = vld [vmem:[%s3525_s1 + $0x58] sm:$0xff]  ;;  %v833_v51 = vld [vmem:[%s3525_s1] sm:$0xff]  ;;  %s2380_s19 = smov 50   ;;  %vm1039_vm9 = vcmask 261120   ;;  %vm1886_vm10 = vcmask 253952  }
  0x13   : > { %v2443_v0 = vld [vmem:[%s2440_s24 + $0x18] sm:$0xff]  ;;  %v2446_v1 = vld [vmem:[%s2440_s24 + $0x20] sm:$0xff]  ;;  %v2454_v5 = vld [vmem:[%s2440_s24 + $0x8] sm:$0xff]  ;;  %2214 = vmatprep.subr.mxu0 %v838_v39  ;;  %2253 = vmatpush3.msra.mxu1 %v2125_v42  ;;  %s2046_s7 = sshll.u32 %s3539_s13, 1 }
  0x14   : > { %v2449_v2 = vld [vmem:[%s2440_s24] sm:$0xff]  ;;  %v328_v3 = vrot.slane %v2443_v0, 1  ;;  %v329_v4 = vrot.slane %v2446_v1, 1  ;;  %v2458_v7 = vld [vmem:[%s2440_s24 + $0x28] sm:$0x3]  ;;  %v324_v8 = vrot.slane %v2454_v5, 1  ;;  %2215 = vmatpush3.msra.mxu0 %v838_v39  ;;  %2254 = vmatprep.subr.mxu1 %v2124_v44 }
  0x15   : > { %v323_v6 = vrot.slane %v2449_v2, 1  ;;  %v331_v9 = vrot.slane %v2458_v7, 1  ;;  %v222_v10 = vld [vmem:[%s2440_s24 + $0x10] sm:$0x3]  ;;  %v2464_v11 = vld [vmem:[%s2440_s24 + $0x38] sm:$0xff]  ;;  %v412_v23 = vrot.slane %v2449_v2, 2  ;;  %2216 = vmatprep.subr.mxu0 %v837_v41  ;;  %2255 = vmatpush3.msra.mxu1 %v2124_v44 }
  0x16   : > { %v330_v12 = vsel %vm322_vm0, %v328_v3, %v329_v4  ;;  %v326_v13 = vrot.slane %v222_v10, 1  ;;  %v2468_v14 = vld [vmem:[%s2440_s24 + $0x40] sm:$0x3]  ;;  %v2471_v15 = vld [vmem:[%s2440_s24 + $0x30] sm:$0xff]  ;;  %v2478_v18 = vrot.slane %v2464_v11, 1  ;;  %v413_v24 = vrot.slane %v2454_v5, 2  ;;  %2217 = vmatpush3.msra.mxu0 %v837_v41  ;;  %2256 = vmatprep.subr.mxu1 %v2123_v47 }
  0x17   : > { %367 = vrot.lane.b32.xlu1 %v330_v12, %s2376_s25  ;;  %v325_v16 = vsel %vm322_vm0, %v323_v6, %v324_v8  ;;  %v332_v17 = vsel %vm322_vm0, %v329_v4, %v331_v9  ;;  %v336_v19 = vrot.slane %v2468_v14, 1  ;;  %v333_v21 = vrot.slane %v2471_v15, 1  ;;  %v2054_v26 = vld [vmem:[%s2440_s24 + $0x28] sm:$0x3]  ;;  %v2080_v45 = vld [vmem:[%s2440_s24 + $0x40] sm:$0x3]  ;;  %2218 = vmatprep.subr.mxu0 %v836_v43 }
  0x18   : > { %363 = vrot.lane.b32.xlu0 %v325_v16, %s2376_s25  ;;  %v327_v20 = vsel %vm322_vm0, %v324_v8, %v326_v13  ;;  %v414_v27 = vsel %vm411_vm1, %v412_v23, %v413_v24  ;;  %v660_v28 = vrot.slane %v2443_v0, 2  ;;  %v2500_v29 = vrot.slane %v2446_v1, 2  ;;  %2219 = vmatpush3.msra.mxu0 %v836_v43  ;;  %v2121_v52 = vld [vmem:[%s3525_s1 + $0x50] sm:$0xff]  ;;  %v2057_v56 = vld [vmem:[%s2440_s24 + $0x40] sm:$0x3]  ;;  %v2120_v57 = vld [vmem:[%s3525_s1 + $0x48] sm:$0xff] }
  0x19   : > { %v337_v22 = vsel %vm322_vm0, %v2478_v18, %v336_v19  ;;  %v2491_v25 = vsel %vm322_vm0, %v333_v21, %v2478_v18  ;;  %v575_v30 = vrot.slane %v2054_v26, 1  ;;  %v415_v33 = vrot.slane %v222_v10, 2  ;;  %2220 = vmatprep.subr.mxu0 %v835_v46  ;;  %2257 = vmatpush3.msra.mxu1 %v2123_v47  ;;  %v2119_v58 = vld [vmem:[%s3525_s1 + $0x40] sm:$0xff]  ;;  %v2618_v8 = vld [vmem:[%s2440_s24 + $0x48] sm:$0xff]  ;;  %v2083_v16 = vld [vmem:[%s2440_s24 + $0x58] sm:$0x3] }
  0x1a   : > { %v2506_v31 = vsel %vm411_vm1, %v660_v28, %v2500_v29  ;;  %v663_v35 = vrot.slane %v2054_v26, 2  ;;  %v1319_v49 = vrot.slane %v2080_v45, 1  ;;  %2221 = vmatpush3.msra.mxu0 %v835_v46  ;;  %2258 = vmatprep.subr.mxu1 %v2122_v50  ;;  %v1404_v54 = vrot.slane %v2471_v15, 2  ;;  %v2060_v21 = vld [vmem:[%s2440_s24 + $0x58] sm:$0x3] }
  0x1b   : > { %369 = vrot.lane.b32.xlu1 %v332_v17, %s2376_s25  ;;  %v576_v32 = vsel %vm322_vm0, %v329_v4, %v575_v30  ;;  %v416_v34 = vsel %vm411_vm1, %v413_v24, %v415_v33  ;;  %2222 = vmatprep.subr.mxu0 %v834_v48  ;;  %v2585_v55 = vrot.slane %v2464_v11, 2  ;;  %v580_v59 = vrot.slane %v2057_v56, 1  ;;  %v2672_v30 = vld [vmem:[%s2440_s24 + $0x60] sm:$0xff]  ;;  %v231_v39 = vld [vmem:[%s2440_s24 + $0x58] sm:$0x3] }
  0x1c   : > { %365 = vrot.lane.b32.xlu0 %v327_v20, %s2376_s25  ;;  %v2525_v38 = vsel %vm411_vm1, %v2500_v29, %v663_v35  ;;  %v1320_v53 = vsel %vm322_vm0, %v2478_v18, %v1319_v49  ;;  %2223 = vmatpush3.msra.mxu0 %v834_v48  ;;  %v1407_v62 = vrot.slane %v2080_v45, 2  ;;  %v420_v3 = vrot.slane %v2458_v7, 2  ;;  %v2623_v7 = vld [vmem:[%s2440_s24 + $0x50] sm:$0xff] }
  0x1d   : > { %2259 = vmatpush3.msra.mxu1 %v2122_v50  ;;  %2224 = vmatprep.subr.mxu0 %v833_v51  ;;  %v1406_v60 = vsel %vm411_vm1, %v1404_v54, %v2585_v55  ;;  %v581_v61 = vsel %vm322_vm0, %v2478_v18, %v580_v59  ;;  %v668_v6 = vrot.slane %v2057_v56, 2  ;;  %v1321_v10 = vrot.slane %v2618_v8, 1  ;;  %v2086_v35 = vld [vmem:[%s2440_s24 + $0x70] sm:$0x3] }
  0x1e   : > { %2260 = vmatprep.subr.mxu1 %v2121_v52  ;;  %2225 = vmatpush3.msra.mxu0 %v833_v51  ;;  %v1408_v63 = vsel %vm411_vm1, %v2585_v55, %v1407_v62  ;;  %v421_v4 = vsel %vm411_vm1, %v2500_v29, %v420_v3  ;;  %v1324_v17 = vrot.slane %v2083_v16, 1  ;;  %v1409_v19 = vrot.slane %v2618_v8, 2  ;;  %v2063_v44 = vld [vmem:[%s2440_s24 + $0x70] sm:$0x3]  ;;  %v2749_v62 = vld [vmem:[%s2440_s24 + $0x78] sm:$0xff] }
  0x1f   : > { %373 = vrot.lane.b32.xlu1 %v337_v22, %s2376_s25  ;;  %2261 = vmatpush3.msra.mxu1 %v2121_v52  ;;  %v669_v9 = vsel %vm411_vm1, %v2585_v55, %v668_v6  ;;  %v2648_v20 = vrot.slane %v2623_v7, 2  ;;  %v585_v22 = vrot.slane %v2060_v21, 1  ;;  %v673_v29 = vrot.slane %v2060_v21, 2 }
  0x20   : > { %371 = vrot.lane.b32.xlu0 %v2491_v25, %s2376_s25  ;;  %2262 = vmatprep.subr.mxu1 %v2120_v57  ;;  %v1414_v36 = vrot.slane %v2672_v30, 2  ;;  %v341_v43 = vrot.slane %v231_v39, 1  ;;  %v590_v46 = vrot.slane %v2063_v44, 1  ;;  %v1417_v51 = vrot.slane %v2086_v35, 2 }
  0x21   : > { %2263 = vmatpush3.msra.mxu1 %v2120_v57  ;;  %v1411_v23 = vsel %vm411_vm1, %v1409_v19, %v2648_v20  ;;  %v430_v56 = vrot.slane %v231_v39, 2  ;;  %v2066_v39 = vld [vmem:[%s2440_s24 + $0x88] sm:$0x3] }
  0x22   : > { %2264 = vmatprep.subr.mxu1 %v2119_v58 }
  0x23   : > { %452 = vrot.lane.b32.xlu1 %v414_v27, %s2377_s26  ;;  %2265 = vmatpush3.msra.mxu1 %v2119_v58  ;;  %v425_v27 = vrot.slane %v2468_v14, 2  ;;  %v2677_v14 = vld [vmem:[%s2440_s24 + $0x68] sm:$0xff]  ;;  %v431_v59 = vsel %vm411_vm1, %v2648_v20, %v430_v56 }
  0x24   : > { %1148 = vrot.lane.b32.xlu0 %v330_v12, %s2376_s25  ;;  %v2684_v33 = vrot.slane %v2677_v14, 1  ;;  %v2702_v37 = vrot.slane %v2677_v14, 2 }
  0x25   : > { %v426_v28 = vsel %vm411_vm1, %v2585_v55, %v425_v27 }
  0x26   : > { %v2710_v40 = vsel %vm411_vm1, %v1414_v36, %v2702_v37  ;;  %v591_v50 = vsel %vm322_vm0, %v2684_v33, %v590_v46  ;;  %v1418_v54 = vsel %vm411_vm1, %v2702_v37, %v1417_v51 }
  0x27   : > { %1196 = vrot.lane.b32.xlu1 %v2506_v31, %s2377_s26 }
  0x28   : > { %1150 = vrot.lane.b32.xlu0 %v576_v32, %s2376_s25 }
  0x2b   : > { %516 = vrot.lane.b32.xlu1 %v2443_v0, %s2378_s27 }
  0x2c   : > { %454 = vrot.lane.b32.xlu0 %v416_v34, %s2377_s26 }
  0x2f   : > { %1260 = vrot.lane.b32.xlu1 %v2471_v15, %s2378_s27 }
  0x30   : > { %1198 = vrot.lane.b32.xlu0 %v2525_v38, %s2377_s26 }
  0x33   : > { %612 = vrot.lane.b32.xlu1 %v330_v12, %s2379_s20  ;;  %v2630_v12 = vrot.slane %v2623_v7, 1 }
  0x34   : > { %518 = vrot.lane.b32.xlu0 %v2446_v1, %s2378_s27 }
  0x35   : > { %v1323_v13 = vsel %vm322_vm0, %v1321_v10, %v2630_v12  ;;  %v1325_v18 = vsel %vm322_vm0, %v2630_v12, %v1324_v17  ;;  %v586_v24 = vsel %vm322_vm0, %v2630_v12, %v585_v22  ;;  %v342_v48 = vsel %vm322_vm0, %v2630_v12, %v341_v43  ;;  %v2089_v22 = vld [vmem:[%s2440_s24 + $0x88] sm:$0x3] }
  0x37   : > { %1356 = vrot.lane.b32.xlu1 %v2491_v25, %s2379_s20 }
  0x38   : > { %1262 = vrot.lane.b32.xlu0 %v2464_v11, %s2378_s27 }
  0x3b   : > { %700 = vrot.lane.b32.xlu1 %v2506_v31, %s2380_s19 }
  0x3c   : > { %614 = vrot.lane.b32.xlu0 %v576_v32, %s2379_s20  ;;  %v1326_v32 = vrot.slane %v2672_v30, 1 }
  0x3e   : > { %v2691_v34 = vsel %vm322_vm0, %v1326_v32, %v2684_v33  ;;  %v234_v32 = vld [vmem:[%s2440_s24 + $0x70] sm:$0x3] }
  0x3f   : > { %1358 = vrot.lane.b32.xlu1 %v1320_v53, %s2379_s20 }
  0x40   : > { %1152 = vrot.lane.b32.xlu0 %v2491_v25, %s2376_s25 }
  0x43   : > { %456 = vrot.lane.b32.xlu1 %v2506_v31, %s2377_s26  ;;  %v674_v31 = vsel %vm411_vm1, %v2648_v20, %v673_v29 }
  0x44   : > { %1444 = vrot.lane.b32.xlu0 %v1406_v60, %s2380_s19 }
  0x47   : > { %1154 = vrot.lane.b32.xlu1 %v581_v61, %s2376_s25 }
  0x48   : > { %702 = vrot.lane.b32.xlu0 %v2525_v38, %s2380_s19  ;;  %v1329_v38 = vrot.slane %v2086_v35, 1 }
  0x4a   : > { %v1330_v42 = vsel %vm322_vm0, %v2684_v33, %v1329_v38  ;;  %v346_v38 = vrot.slane %v234_v32, 1 }
  0x4b   : > { %1446 = vrot.lane.b32.xlu1 %v1408_v63, %s2380_s19 }
  0x4c   : > { %1200 = vrot.lane.b32.xlu0 %v1406_v60, %s2377_s26 }
  0x4f   : > { %520 = vrot.lane.b32.xlu1 %v2471_v15, %s2378_s27 }
  0x50   : > { %458 = vrot.lane.b32.xlu0 %v421_v4, %s2377_s26  ;;  %v2756_v4 = vld [vmem:[%s2440_s24 + $0x80] sm:$0xff] }
  0x51   : > { %v2764_v10 = vrot.slane %v2756_v4, 1 }
  0x53   : > { %1264 = vrot.lane.b32.xlu1 %v2618_v8, %s2378_s27 }
  0x54   : > { %1202 = vrot.lane.b32.xlu0 %v669_v9, %s2377_s26 }
  0x57   : > { %616 = vrot.lane.b32.xlu1 %v2491_v25, %s2379_s20  ;;  %v1412_v25 = vrot.slane %v2083_v16, 2 }
  0x58   : > { %522 = vrot.lane.b32.xlu0 %v2464_v11, %s2378_s27 }
  0x59   : > { %v1413_v26 = vsel %vm411_vm1, %v2648_v20, %v1412_v25  ;;  %v1419_v25 = vrot.slane %v2749_v62, 2 }
  0x5b   : > { %1360 = vrot.lane.b32.xlu1 %v1323_v13, %s2379_s20 }
  0x5c   : > { %1266 = vrot.lane.b32.xlu0 %v2623_v7, %s2378_s27 }
  0x5f   : > { %704 = vrot.lane.b32.xlu1 %v1406_v60, %s2380_s19 }
  0x60   : > { %618 = vrot.lane.b32.xlu0 %v581_v61, %s2379_s20 }
  0x63   : > { %1362 = vrot.lane.b32.xlu1 %v1325_v18, %s2379_s20 }
  0x64   : > { %1156 = vrot.lane.b32.xlu0 %v1323_v13, %s2376_s25 }
  0x67   : > { %460 = vrot.lane.b32.xlu1 %v1406_v60, %s2377_s26  ;;  %v678_v60 = vrot.slane %v2063_v44, 2 }
  0x68   : > { %1448 = vrot.lane.b32.xlu0 %v1411_v23, %s2380_s19 }
  0x69   : > { %v2753_v3 = vsel %vm411_vm1, %v2702_v37, %v678_v60 }
  0x6b   : > { %1158 = vrot.lane.b32.xlu1 %v586_v24, %s2376_s25 }
  0x6c   : > { %706 = vrot.lane.b32.xlu0 %v669_v9, %s2380_s19  ;;  %v1331_v9 = vrot.slane %v2749_v62, 1 }
  0x6e   : > { %v2774_v16 = vsel %vm322_vm0, %v1331_v9, %v2764_v10 }
  0x6f   : > { %1450 = vrot.lane.b32.xlu1 %v1413_v26, %s2380_s19 }
  0x70   : > { %1204 = vrot.lane.b32.xlu0 %v1411_v23, %s2377_s26 }
  0x73   : > { %524 = vrot.lane.b32.xlu1 %v2618_v8, %s2378_s27 }
  0x74   : > { %462 = vrot.lane.b32.xlu0 %v426_v28, %s2377_s26  ;;  %v1334_v28 = vrot.slane %v2089_v22, 1 }
  0x76   : > { %v1335_v36 = vsel %vm322_vm0, %v2764_v10, %v1334_v28 }
  0x77   : > { %1268 = vrot.lane.b32.xlu1 %v2672_v30, %s2378_s27 }
  0x78   : > { %1206 = vrot.lane.b32.xlu0 %v674_v31, %s2377_s26 }
  0x7b   : > { %620 = vrot.lane.b32.xlu1 %v1323_v13, %s2379_s20 }
  0x7c   : > { %526 = vrot.lane.b32.xlu0 %v2623_v7, %s2378_s27 }
  0x7f   : > { %1364 = vrot.lane.b32.xlu1 %v2691_v34, %s2379_s20 }
  0x80   : > { %1270 = vrot.lane.b32.xlu0 %v2677_v14, %s2378_s27 }
  0x83   : > { %622 = vrot.lane.b32.xlu1 %v586_v24, %s2379_s20 }
  0x84   : > { %375 = vrot.lane.b32.xlu0 %v1323_v13, %s2376_s25 }
  0x87   : > { %1160 = vrot.lane.b32.xlu1 %v2691_v34, %s2376_s25 }
  0x88   : > { %708 = vrot.lane.b32.xlu0 %v1411_v23, %s2380_s19 }
  0x89   : > { %v2712_v41 = vpop.permute.xlu1 %367 }
  0x8a   : > { %v364_v45 = vpop.permute.xlu0 %363 }
  0x8b   : > { %1452 = vrot.lane.b32.xlu1 %v2710_v40, %s2380_s19  ;;  %v749_v20 = vsel %vm748_vm3, %v2449_v2, %v364_v45  ;;  %v2790_v2 = vrot.slane %v2756_v4, 2  ;;  %v595_v45 = vrot.slane %v2066_v39, 1 }
  0x8c   : > { %1366 = vrot.lane.b32.xlu0 %v1330_v42, %s2379_s20 }
  0x8d   : > { %v2720_v47 = vpop.permute.xlu1 %369 }
  0x8e   : > { %v2724_v49 = vpop.permute.xlu0 %365 }
  0x8f   : > { %464 = vrot.lane.b32.xlu1 %v1411_v23, %s2377_s26 }
  0x90   : > { %377 = vrot.lane.b32.xlu0 %v342_v48, %s2376_s25 }
  0x91   : > { %v2730_v52 = vpop.permute.xlu1 %373 }
  0x92   : > { %v2732_v53 = vpop.permute.xlu0 %371 }
  0x93   : > { %1162 = vrot.lane.b32.xlu1 %v591_v50, %s2376_s25 }
  0x94   : > { %710 = vrot.lane.b32.xlu0 %v674_v31, %s2380_s19 }
  0x95   : > { %v453_v55 = vpop.permute.xlu1 %452 }
  0x96   : > { %v1149_v57 = vpop.permute.xlu0 %1148  ;;  %v766_v23 = vsel %vm765_vm4, %v749_v20, %v453_v55  ;;  %v750_v55 = vsel %vm748_vm3, %v2454_v5, %v2724_v49 }
  0x97   : > { %1454 = vrot.lane.b32.xlu1 %v1418_v54, %s2380_s19  ;;  %v1492_v43 = vsel %vm748_vm3, %v2443_v0, %v1149_v57 }
  0x98   : > { %1208 = vrot.lane.b32.xlu0 %v2710_v40, %s2377_s26 }
  0x99   : > { %v1197_v58 = vpop.permute.xlu1 %1196 }
  0x9a   : > { %v2743_v61 = vpop.permute.xlu0 %1150  ;;  %v1508_v44 = vsel %vm765_vm4, %v1492_v43, %v1197_v58  ;;  %v1422_v58 = vrot.slane %v2089_v22, 2 }
  0x9b   : > { %528 = vrot.lane.b32.xlu1 %v2672_v30, %s2378_s27  ;;  %v1493_v5 = vsel %vm748_vm3, %v2446_v1, %v2743_v61 }
  0x9c   : > { %466 = vrot.lane.b32.xlu0 %v431_v59, %s2377_s26  ;;  %v1423_v61 = vsel %vm411_vm1, %v2790_v2, %v1422_v58 }
  0x9d   : > { %v517_v63 = vpop.permute.xlu1 %516 }
  0x9e   : > { %v455_v6 = vpop.permute.xlu0 %454  ;;  %v783_v24 = vsel %vm782_vm5, %v766_v23, %v517_v63  ;;  %v2859_v23 = vld [vmem:[%s2440_s24 + $0x90] sm:$0xff] }
  0x9f   : > { %1272 = vrot.lane.b32.xlu1 %v2749_v62, %s2378_s27  ;;  %v767_v57 = vsel %vm765_vm4, %v750_v55, %v455_v6 }
  0xa0   : > { %1210 = vrot.lane.b32.xlu0 %v2753_v3, %s2377_s26 }
  0xa1   : > { %v1261_v12 = vpop.permute.xlu1 %1260 }
  0xa2   : > { %v2766_v13 = vpop.permute.xlu0 %1198  ;;  %v1524_v46 = vsel %vm782_vm5, %v1508_v44, %v1261_v12 }
  0xa3   : > { %624 = vrot.lane.b32.xlu1 %v2691_v34, %s2379_s20  ;;  %v1509_v63 = vsel %vm765_vm4, %v1493_v5, %v2766_v13  ;;  %v435_v13 = vrot.slane %v234_v32, 2 }
  0xa4   : > { %530 = vrot.lane.b32.xlu0 %v2677_v14, %s2378_s27 }
  0xa5   : > { %v613_v17 = vpop.permute.xlu1 %612  ;;  %v436_v20 = vsel %vm411_vm1, %v2702_v37, %v435_v13  ;;  %v1336_v37 = vrot.slane %v2859_v23, 1 }
  0xa6   : > { %v519_v18 = vpop.permute.xlu0 %518  ;;  %v800_v26 = vsel %vm799_vm6, %v783_v24, %v613_v17 }
  0xa7   : > { %1368 = vrot.lane.b32.xlu1 %v2774_v16, %s2379_s20  ;;  %v784_v59 = vsel %vm782_vm5, %v767_v57, %v519_v18 }
  0xa8   : > { %1274 = vrot.lane.b32.xlu0 %v2756_v4, %s2378_s27 }
  0xa9   : > { %v1357_v19 = vpop.permute.xlu1 %1356 }
  0xaa   : > { %v1263_v21 = vpop.permute.xlu0 %1262  ;;  %v1540_v51 = vsel %vm799_vm6, %v1524_v46, %v1357_v19 }
  0xab   : > { %626 = vrot.lane.b32.xlu1 %v591_v50, %s2379_s20  ;;  %v347_v50 = vsel %vm322_vm0, %v2684_v33, %v346_v38  ;;  %v596_v33 = vsel %vm322_vm0, %v2764_v10, %v595_v45  ;;  %v1525_v9 = vsel %vm782_vm5, %v1509_v63, %v1263_v21  ;;  %v683_v21 = vrot.slane %v2066_v39, 2 }
  0xac   : > { %379 = vrot.lane.b32.xlu0 %v2691_v34, %s2376_s25  ;;  %v2802_v34 = vsel %vm411_vm1, %v1419_v25, %v2790_v2 }
  0xad   : > { %v701_v27 = vpop.permute.xlu1 %700  ;;  %v2863_v25 = vsel %vm411_vm1, %v2790_v2, %v683_v21 }
  0xae   : > { %v615_v29 = vpop.permute.xlu0 %614  ;;  %v817_v31 = vsel %vm816_vm7, %v800_v26, %v701_v27  ;;  %v2866_v26 = vld [vmem:[%s2440_s24 + $0x98] sm:$0xff] }
  0xaf   : > { %1164 = vrot.lane.b32.xlu1 %v2774_v16, %s2376_s25  ;;  %2226 = vmatprep.mubr.msk.f32.mxu0 %vm841_vm8, %v817_v31  ;;  %v2874_v28 = vrot.slane %v2866_v26, 1 }
  0xb0   : > { %712 = vrot.lane.b32.xlu0 %v2710_v40, %s2380_s19 }
  0xb1   : > { %v1359_v35 = vpop.permute.xlu1 %1358  ;;  %v2882_v32 = vsel %vm322_vm0, %v1336_v37, %v2874_v28 }
  0xb2   : > { %v2807_v42 = vpop.permute.xlu0 %1152  ;;  %v1541_v12 = vsel %vm799_vm6, %v1525_v9, %v1359_v35 }
  0xb3   : > { %1456 = vrot.lane.b32.xlu1 %v2802_v34, %s2380_s19  ;;  %v1494_v57 = vsel %vm748_vm3, %v2471_v15, %v2807_v42 }
  0xb4   : > { %1370 = vrot.lane.b32.xlu0 %v1335_v36, %s2379_s20  ;;  %v751_v36 = vsel %vm748_vm3, %v2443_v0, %v2712_v41  ;;  %v1424_v0 = vrot.slane %v2859_v23, 2  ;;  %v2902_v41 = vrot.slane %v2866_v26, 2 }
  0xb5   : > { %v457_v48 = vpop.permute.xlu1 %456 }
  0xb6   : > { %v1445_v54 = vpop.permute.xlu0 %1444  ;;  %v768_v39 = vsel %vm765_vm4, %v751_v36, %v457_v48 }
  0xb7   : > { %468 = vrot.lane.b32.xlu1 %v2710_v40, %s2377_s26  ;;  %v1556_v56 = vsel %vm816_vm7, %v1540_v51, %v1445_v54  ;;  %v801_v40 = vsel %vm799_vm6, %v784_v59, %v615_v29  ;;  %v2092_v51 = vld [vmem:[%s2440_s24 + $0xa0] sm:$0x3] }
  0xb8   : > { %381 = vrot.lane.b32.xlu0 %v347_v50, %s2376_s25  ;;  %2266 = vmatprep.mubr.msk.f32.mxu1 %vm841_vm8, %v1556_v56  ;;  %v1339_v54 = vrot.slane %v2092_v51, 1  ;;  %v237_v56 = vld [vmem:[%s2440_s24 + $0x88] sm:$0x3] }
  0xb9   : > { %v2831_v60 = vpop.permute.xlu1 %1154  ;;  %v351_v42 = vrot.slane %v237_v56, 1 }
  0xba   : > { %v703_v49 = vpop.permute.xlu0 %702  ;;  %v1340_v5 = vsel %vm322_vm0, %v2874_v28, %v1339_v54 }
  0xbb   : > { %v818_v6 = vsel %vm816_vm7, %v801_v40, %v703_v49  ;;  %1166 = vrot.lane.b32.xlu1 %v596_v33, %s2376_s25  ;;  %v2069_v40 = vld [vmem:[%s2440_s24 + $0xa0] sm:$0x3] }
  0xbc   : > { %714 = vrot.lane.b32.xlu0 %v2753_v3, %s2380_s19  ;;  %2227 = vmatmul.mubr.msk.f32.vlgmr.msra.gmra.mxu0 %vm841_vm8, %v818_v6  ;;  %v752_v6 = vsel %vm748_vm3, %v2446_v1, %v2720_v47  ;;  %v1495_v1 = vsel %vm748_vm3, %v2464_v11, %v2831_v60  ;;  %v1427_v60 = vrot.slane %v2092_v51, 2 }
  0xbd   : > { %v1447_v17 = vpop.permute.xlu1 %1446 }
  0xbe   : > { %v1557_v18 = vsel %vm816_vm7, %v1541_v12, %v1447_v17  ;;  %v1201_v19 = vpop.permute.xlu0 %1200  ;;  %v600_v12 = vrot.slane %v2069_v40, 1 }
  0xbf   : > { %1458 = vrot.lane.b32.xlu1 %v1423_v61, %s2380_s19  ;;  %2267 = vmatmul.mubr.msk.f32.vlgmr.msra.gmra.mxu1 %vm841_vm8, %v1557_v18  ;;  %v352_v18 = vsel %vm322_vm0, %v2764_v10, %v351_v42 }
  0xc0   : > { %1212 = vrot.lane.b32.xlu0 %v2802_v34, %s2377_s26  ;;  %v601_v10 = vsel %vm322_vm0, %v2874_v28, %v600_v12 }
  0xc1   : > { %v521_v3 = vpop.permute.xlu1 %520 }
  0xc2   : > { %v459_v22 = vpop.permute.xlu0 %458  ;;  %v785_v43 = vsel %vm782_vm5, %v768_v39, %v521_v3  ;;  %v688_v39 = vrot.slane %v2069_v40, 2 }
  0xc3   : > { %532 = vrot.lane.b32.xlu1 %v2749_v62, %s2378_s27  ;;  %v769_v61 = vsel %vm765_vm4, %v752_v6, %v459_v22 }
  0xc4   : > { %470 = vrot.lane.b32.xlu0 %v436_v20, %s2377_s26 }
  0xc5   : > { %v1265_v24 = vpop.permute.xlu1 %1264 }
  0xc6   : > { %v1203_v27 = vpop.permute.xlu0 %1202 }
  0xc7   : > { %1276 = vrot.lane.b32.xlu1 %v2859_v23, %s2378_s27  ;;  %v1511_v3 = vsel %vm765_vm4, %v1495_v1, %v1203_v27 }
  0xc8   : > { %1214 = vrot.lane.b32.xlu0 %v2863_v25, %s2377_s26 }
  0xc9   : > { %v617_v29 = vpop.permute.xlu1 %616 }
  0xca   : > { %v523_v31 = vpop.permute.xlu0 %522  ;;  %v802_v44 = vsel %vm799_vm6, %v785_v43, %v617_v29 }
  0xcb   : > { %628 = vrot.lane.b32.xlu1 %v2774_v16, %s2379_s20  ;;  %v786_v17 = vsel %vm782_vm5, %v769_v61, %v523_v31  ;;  %v440_v31 = vrot.slane %v237_v56, 2 }
  0xcc   : > { %534 = vrot.lane.b32.xlu0 %v2756_v4, %s2378_s27 }
  0xcd   : > { %v1361_v35 = vpop.permute.xlu1 %1360 }
  0xce   : > { %v1267_v38 = vpop.permute.xlu0 %1266 }
  0xcf   : > { %1372 = vrot.lane.b32.xlu1 %v2882_v32, %s2379_s20  ;;  %v1527_v21 = vsel %vm782_vm5, %v1511_v3, %v1267_v38  ;;  %v441_v38 = vsel %vm411_vm1, %v2790_v2, %v440_v31 }
  0xd0   : > { %1278 = vrot.lane.b32.xlu0 %v2866_v26, %s2378_s27 }
  0xd1   : > { %v705_v45 = vpop.permute.xlu1 %704 }
  0xd2   : > { %v819_v46 = vsel %vm816_vm7, %v802_v44, %v705_v45  ;;  %v619_v50 = vpop.permute.xlu0 %618  ;;  %v2976_v45 = vsel %vm411_vm1, %v2902_v41, %v688_v39 }
  0xd3   : > { %630 = vrot.lane.b32.xlu1 %v596_v33, %s2379_s20  ;;  %2229 = vmatprep.mubr.msk.f32.mxu0 %vm841_vm8, %v819_v46  ;;  %v1510_v33 = vsel %vm765_vm4, %v1494_v57, %v1201_v19  ;;  %v803_v47 = vsel %vm799_vm6, %v786_v17, %v619_v50  ;;  %v2979_v46 = vld [vmem:[%s2440_s24 + $0xb0] sm:$0xff] }
  0xd4   : > { %383 = vrot.lane.b32.xlu0 %v2774_v16, %s2376_s25  ;;  %v2917_v16 = vsel %vm411_vm1, %v1424_v0, %v2902_v41  ;;  %v1526_v58 = vsel %vm782_vm5, %v1510_v33, %v1265_v24  ;;  %v2987_v51 = vrot.slane %v2979_v46, 1  ;;  %v753_v33 = vsel %vm748_vm3, %v2471_v15, %v2732_v53  ;;  %v2095_v53 = vld [vmem:[%s2440_s24 + $0xb8] sm:$0x3] }
  0xd5   : > { %v1363_v48 = vpop.permute.xlu1 %1362  ;;  %v1542_v49 = vsel %vm799_vm6, %v1526_v58, %v1361_v35  ;;  %v1344_v17 = vrot.slane %v2095_v53, 1 }
  0xd6   : > { %v2904_v55 = vpop.permute.xlu0 %1156  ;;  %v1543_v22 = vsel %vm799_vm6, %v1527_v21, %v1363_v48  ;;  %v2072_v21 = vld [vmem:[%s2440_s24 + $0xb8] sm:$0x3] }
  0xd7   : > { %1168 = vrot.lane.b32.xlu1 %v2882_v32, %s2376_s25  ;;  %v1496_v40 = vsel %vm748_vm3, %v2618_v8, %v2904_v55  ;;  %v3025_v55 = vrot.slane %v2979_v46, 2  ;;  %v1345_v3 = vsel %vm322_vm0, %v2987_v51, %v1344_v17 }
  0xd8   : > { %716 = vrot.lane.b32.xlu0 %v2802_v34, %s2380_s19 }
  0xd9   : > { %v2920_v59 = vpop.permute.xlu1 %460 }
  0xda   : > { %v1449_v63 = vpop.permute.xlu0 %1448  ;;  %v770_v58 = vsel %vm765_vm4, %v753_v33, %v2920_v59  ;;  %v693_v33 = vrot.slane %v2072_v21, 2 }
  0xdb   : > { %v1558_v9 = vsel %vm816_vm7, %v1542_v49, %v1449_v63  ;;  %1460 = vrot.lane.b32.xlu1 %v2917_v16, %s2380_s19 }
  0xdc   : > { %1374 = vrot.lane.b32.xlu0 %v1340_v5, %s2379_s20  ;;  %2269 = vmatprep.mubr.msk.f32.mxu1 %vm841_vm8, %v1558_v9 }
  0xdd   : > { %v2936_v13 = vpop.permute.xlu1 %1158 }
  0xde   : > { %v707_v19 = vpop.permute.xlu0 %706 }
  0xdf   : > { %v820_v20 = vsel %vm816_vm7, %v803_v47, %v707_v19  ;;  %472 = vrot.lane.b32.xlu1 %v2802_v34, %s2377_s26  ;;  %v1428_v34 = vsel %vm411_vm1, %v2902_v41, %v1427_v60  ;;  %v240_v47 = vld [vmem:[%s2440_s24 + $0xa0] sm:$0x3]  ;;  %v754_v60 = vsel %vm748_vm3, %v2464_v11, %v2730_v52 }
  0xe0   : > { %385 = vrot.lane.b32.xlu0 %v352_v18, %s2376_s25  ;;  %2230 = vmatmul.mubr.msk.f32.gmra.mxu0 %vm841_vm8, %v820_v20  ;;  %v356_v20 = vrot.slane %v240_v47, 1 }
  0xe1   : > { %v1451_v24 = vpop.permute.xlu1 %1450 }
  0xe2   : > { %v1559_v27 = vsel %vm816_vm7, %v1543_v22, %v1451_v24  ;;  %v1205_v37 = vpop.permute.xlu0 %1204  ;;  %v605_v24 = vrot.slane %v2072_v21, 1 }
  0xe3   : > { %1170 = vrot.lane.b32.xlu1 %v601_v10, %s2376_s25  ;;  %2270 = vmatmul.mubr.msk.f32.gmra.mxu1 %vm841_vm8, %v1559_v27  ;;  %v1512_v63 = vsel %vm765_vm4, %v1496_v40, %v1205_v37  ;;  %v3093_v40 = vsel %vm411_vm1, %v3025_v55, %v693_v33 }
  0xe4   : > { %718 = vrot.lane.b32.xlu0 %v2863_v25, %s2380_s19  ;;  %v2972_v25 = vld [vmem:[%s2440_s24 + $0xa8] sm:$0xff] }
  0xe5   : > { %v525_v29 = vpop.permute.xlu1 %524  ;;  %v1341_v2 = vrot.slane %v2972_v25, 1  ;;  %v1429_v9 = vrot.slane %v2972_v25, 2 }
  0xe6   : > { %v463_v35 = vpop.permute.xlu0 %462  ;;  %v787_v5 = vsel %vm782_vm5, %v770_v58, %v525_v29  ;;  %v1497_v29 = vsel %vm748_vm3, %v2623_v7, %v2936_v13  ;;  %v1432_v13 = vrot.slane %v2095_v53, 2 }
  0xe7   : > { %1462 = vrot.lane.b32.xlu1 %v1428_v34, %s2380_s19  ;;  %v2995_v54 = vsel %vm322_vm0, %v1341_v2, %v2987_v51  ;;  %v771_v22 = vsel %vm765_vm4, %v754_v60, %v463_v35  ;;  %v357_v34 = vsel %vm322_vm0, %v2874_v28, %v356_v20  ;;  %v606_v28 = vsel %vm322_vm0, %v2987_v51, %v605_v24 }
  0xe8   : > { %1216 = vrot.lane.b32.xlu0 %v2917_v16, %s2377_s26  ;;  %v445_v2 = vrot.slane %v240_v47, 2 }
  0xe9   : > { %v1269_v36 = vpop.permute.xlu1 %1268 }
  0xea   : > { %v2966_v43 = vpop.permute.xlu0 %1206  ;;  %v1528_v6 = vsel %vm782_vm5, %v1512_v63, %v1269_v36 }
  0xeb   : > { %536 = vrot.lane.b32.xlu1 %v2859_v23, %s2378_s27  ;;  %v1513_v31 = vsel %vm765_vm4, %v1497_v29, %v2966_v43 }
  0xec   : > { %474 = vrot.lane.b32.xlu0 %v441_v38, %s2377_s26 }
  0xed   : > { %v621_v44 = vpop.permute.xlu1 %620 }
  0xee   : > { %v527_v50 = vpop.permute.xlu0 %526  ;;  %v804_v49 = vsel %vm799_vm6, %v787_v5, %v621_v44 }
  0xef   : > { %1280 = vrot.lane.b32.xlu1 %v2972_v25, %s2378_s27  ;;  %v788_v27 = vsel %vm782_vm5, %v771_v22, %v527_v50 }
  0xf0   : > { %1218 = vrot.lane.b32.xlu0 %v2976_v45, %s2377_s26 }
  0xf1   : > { %v1365_v0 = vpop.permute.xlu1 %1364 }
  0xf2   : > { %v1271_v48 = vpop.permute.xlu0 %1270  ;;  %v1544_v61 = vsel %vm799_vm6, %v1528_v6, %v1365_v0 }
  0xf3   : > { %632 = vrot.lane.b32.xlu1 %v2882_v32, %s2379_s20  ;;  %v1529_v36 = vsel %vm782_vm5, %v1513_v31, %v1271_v48 }
  0xf4   : > { %538 = vrot.lane.b32.xlu0 %v2866_v26, %s2378_s27 }
  0xf5   : > { %v623_v56 = vpop.permute.xlu1 %622 }
  0xf6   : > { %v2997_v57 = vpop.permute.xlu0 %375  ;;  %v805_v11 = vsel %vm799_vm6, %v788_v27, %v623_v56  ;;  %v446_v56 = vsel %vm411_vm1, %v2902_v41, %v445_v2 }
  0xf7   : > { %1376 = vrot.lane.b32.xlu1 %v2995_v54, %s2379_s20 }
  0xf8   : > { %1282 = vrot.lane.b32.xlu0 %v2979_v46, %s2378_s27 }
  0xf9   : > { %v3009_v42 = vpop.permute.xlu1 %1160 }
  0xfa   : > { %v709_v15 = vpop.permute.xlu0 %708  ;;  %v1498_v47 = vsel %vm748_vm3, %v2672_v30, %v3009_v42 }
  0xfb   : > { %v821_v59 = vsel %vm816_vm7, %v804_v49, %v709_v15  ;;  %634 = vrot.lane.b32.xlu1 %v601_v10, %s2379_s20  ;;  %v3096_v49 = vld [vmem:[%s2440_s24 + $0xc8] sm:$0xff] }
  0xfc   : > { %387 = vrot.lane.b32.xlu0 %v2882_v32, %s2376_s25  ;;  %2232 = vmatprep.mubr.msk.f32.mxu0 %vm841_vm8, %v821_v59  ;;  %v3037_v32 = vsel %vm411_vm1, %v1429_v9, %v3025_v55  ;;  %v1347_v53 = vrot.slane %v3096_v49, 1  ;;  %v1435_v42 = vrot.slane %v3096_v49, 2 }
  0xfd   : > { %v1453_v12 = vpop.permute.xlu1 %1452 }
  0xfe   : > { %v1560_v18 = vsel %vm816_vm7, %v1544_v61, %v1453_v12  ;;  %v1367_v1 = vpop.permute.xlu0 %1366  ;;  %v755_v12 = vsel %vm748_vm3, %v2618_v8, %v2997_v57  ;;  %v2098_v57 = vld [vmem:[%s2440_s24 + $0xd0] sm:$0x3] }
  0xff   : > { %1172 = vrot.lane.b32.xlu1 %v2995_v54, %s2376_s25  ;;  %2272 = vmatprep.mubr.msk.f32.mxu1 %vm841_vm8, %v1560_v18  ;;  %v1545_v38 = vsel %vm799_vm6, %v1529_v36, %v1367_v1  ;;  %v1349_v27 = vrot.slane %v2098_v57, 1  ;;  %v2075_v36 = vld [vmem:[%s2440_s24 + $0xd0] sm:$0x3] }
 0x100   : > { %720 = vrot.lane.b32.xlu0 %v2917_v16, %s2380_s19 }
 0x101   : > { %v465_v19 = vpop.permute.xlu1 %464  ;;  %v1350_v31 = vsel %vm322_vm0, %v1347_v53, %v1349_v27 }
 0x102   : > { %v3042_v10 = vpop.permute.xlu0 %377  ;;  %v772_v17 = vsel %vm765_vm4, %v755_v12, %v465_v19 }
 0x103   : > { %1464 = vrot.lane.b32.xlu1 %v3037_v32, %s2380_s19 }
 0x104   : > { %1378 = vrot.lane.b32.xlu0 %v1345_v3, %s2379_s20 }
 0x105   : > { %v3052_v37 = vpop.permute.xlu1 %1162 }
 0x106   : > { %v711_v52 = vpop.permute.xlu0 %710 }
 0x107   : > { %v822_v35 = vsel %vm816_vm7, %v805_v11, %v711_v52  ;;  %476 = vrot.lane.b32.xlu1 %v2917_v16, %s2377_s26  ;;  %v1433_v16 = vsel %vm411_vm1, %v3025_v55, %v1432_v13  ;;  %v243_v11 = vld [vmem:[%s2440_s24 + $0xb8] sm:$0x3]  ;;  %v756_v13 = vsel %vm748_vm3, %v2623_v7, %v3042_v10 }
 0x108   : > { %389 = vrot.lane.b32.xlu0 %v357_v34, %s2376_s25  ;;  %2233 = vmatmul.mubr.msk.f32.gmra.mxu0 %vm841_vm8, %v822_v35  ;;  %v361_v35 = vrot.slane %v243_v11, 1 }
 0x109   : > { %v1455_v39 = vpop.permute.xlu1 %1454 }
 0x10a   : > { %v1561_v43 = vsel %vm816_vm7, %v1545_v38, %v1455_v39  ;;  %v1209_v44 = vpop.permute.xlu0 %1208  ;;  %v610_v39 = vrot.slane %v2075_v36, 1 }
 0x10b   : > { %1174 = vrot.lane.b32.xlu1 %v606_v28, %s2376_s25  ;;  %2273 = vmatmul.mubr.msk.f32.gmra.mxu1 %vm841_vm8, %v1561_v43  ;;  %v1514_v20 = vsel %vm765_vm4, %v1498_v47, %v1209_v44  ;;  %v2100_v47 = vld [vmem:[%s2440_s24 + $0xe0] sm:$0xff] }
 0x10c   : > { %722 = vrot.lane.b32.xlu0 %v2976_v45, %s2380_s19  ;;  %v3089_v45 = vld [vmem:[%s2440_s24 + $0xc0] sm:$0xff] }
 0x10d   : > { %v529_v50 = vpop.permute.xlu1 %528  ;;  %v1346_v41 = vrot.slane %v3089_v45, 1  ;;  %v1434_v60 = vrot.slane %v3089_v45, 2 }
 0x10e   : > { %v467_v0 = vpop.permute.xlu0 %466  ;;  %v789_v18 = vsel %vm782_vm5, %v772_v17, %v529_v50  ;;  %v1499_v50 = vsel %vm748_vm3, %v2677_v14, %v3052_v37  ;;  %v1437_v37 = vrot.slane %v2098_v57, 2 }
 0x10f   : > { %1466 = vrot.lane.b32.xlu1 %v1433_v16, %s2380_s19  ;;  %v3109_v6 = vsel %vm322_vm0, %v1346_v41, %v1347_v53  ;;  %v773_v38 = vsel %vm765_vm4, %v756_v13, %v467_v0  ;;  %v362_v16 = vsel %vm322_vm0, %v2987_v51, %v361_v35  ;;  %v611_v51 = vsel %vm322_vm0, %v1347_v53, %v610_v39 }
 0x110   : > { %1220 = vrot.lane.b32.xlu0 %v3037_v32, %s2377_s26  ;;  %v450_v41 = vrot.slane %v243_v11, 2 }
 0x111   : > { %v1273_v48 = vpop.permute.xlu1 %1272 }
 0x112   : > { %v3083_v58 = vpop.permute.xlu0 %1210  ;;  %v1530_v21 = vsel %vm782_vm5, %v1514_v20, %v1273_v48 }
 0x113   : > { %540 = vrot.lane.b32.xlu1 %v2972_v25, %s2378_s27  ;;  %v1515_v2 = vsel %vm765_vm4, %v1499_v50, %v3083_v58 }
 0x114   : > { %478 = vrot.lane.b32.xlu0 %v446_v56, %s2377_s26 }
 0x115   : > { %v625_v5 = vpop.permute.xlu1 %624 }
 0x116   : > { %v531_v15 = vpop.permute.xlu0 %530  ;;  %v806_v3 = vsel %vm799_vm6, %v789_v18, %v625_v5 }
 0x117   : > { %1284 = vrot.lane.b32.xlu1 %v3089_v45, %s2378_s27  ;;  %v790_v43 = vsel %vm782_vm5, %v773_v38, %v531_v15 }
 0x118   : > { %1222 = vrot.lane.b32.xlu0 %v3093_v40, %s2377_s26 }
 0x119   : > { %v1369_v63 = vpop.permute.xlu1 %1368 }
 0x11a   : > { %v1275_v59 = vpop.permute.xlu0 %1274  ;;  %v1546_v22 = vsel %vm799_vm6, %v1530_v21, %v1369_v63 }
 0x11b   : > { %636 = vrot.lane.b32.xlu1 %v2995_v54, %s2379_s20  ;;  %v1531_v48 = vsel %vm782_vm5, %v1515_v2, %v1275_v59  ;;  %v451_v59 = vsel %vm411_vm1, %v3025_v55, %v450_v41  ;;  %v1352_v55 = vrot.slane %v2100_v47, 1 }
 0x11c   : > { %542 = vrot.lane.b32.xlu0 %v2979_v46, %s2378_s27 }
 0x11d   : > { %v627_v9 = vpop.permute.xlu1 %626 }
 0x11e   : > { %v3111_v61 = vpop.permute.xlu0 %379  ;;  %v807_v7 = vsel %vm799_vm6, %v790_v43, %v627_v9  ;;  %v698_v9 = vrot.slane %v2075_v36, 2 }
 0x11f   : > { %1380 = vrot.lane.b32.xlu1 %v3109_v6, %s2379_s20 }
 0x120   : > { %1286 = vrot.lane.b32.xlu0 %v3096_v49, %s2378_s27  ;;  %v699_v18 = vsel %vm411_vm1, %v1435_v42, %v698_v9 }
 0x121   : > { %v3122_v1 = vpop.permute.xlu1 %1164 }
 0x122   : > { %v713_v8 = vpop.permute.xlu0 %712 }
 0x123   : > { %v823_v19 = vsel %vm816_vm7, %v806_v3, %v713_v8  ;;  %638 = vrot.lane.b32.xlu1 %v606_v28, %s2379_s20 }
 0x124   : > { %391 = vrot.lane.b32.xlu0 %v2995_v54, %s2376_s25  ;;  %2235 = vmatprep.mubr.msk.f32.mxu0 %vm841_vm8, %v823_v19  ;;  %v3147_v54 = vsel %vm411_vm1, %v1434_v60, %v1435_v42 }
 0x125   : > { %v1457_v24 = vpop.permute.xlu1 %1456 }
 0x126   : > { %v1562_v34 = vsel %vm816_vm7, %v1546_v22, %v1457_v24  ;;  %v1371_v29 = vpop.permute.xlu0 %1370  ;;  %v757_v22 = vsel %vm748_vm3, %v2672_v30, %v3111_v61 }
 0x127   : > { %1176 = vrot.lane.b32.xlu1 %v3109_v6, %s2376_s25  ;;  %2275 = vmatprep.mubr.msk.f32.mxu1 %vm841_vm8, %v1562_v34  ;;  %v1547_v56 = vsel %vm799_vm6, %v1531_v48, %v1371_v29 }
 0x128   : > { %724 = vrot.lane.b32.xlu0 %v3037_v32, %s2380_s19 }
 0x129   : > { %v3149_v52 = vpop.permute.xlu1 %468 }
 0x12a   : > { %v3153_v28 = vpop.permute.xlu0 %381  ;;  %v774_v24 = vsel %vm765_vm4, %v757_v22, %v3149_v52 }
 0x12b   : > { %1468 = vrot.lane.b32.xlu1 %v3147_v54, %s2380_s19  ;;  %v758_v2 = vsel %vm748_vm3, %v2677_v14, %v3153_v28 }
 0x12c   : > { %1382 = vrot.lane.b32.xlu0 %v1350_v31, %s2379_s20  ;;  %v1500_v31 = vsel %vm748_vm3, %v2749_v62, %v3122_v1 }
 0x12d   : > { %v3163_v44 = vpop.permute.xlu1 %1166 }
 0x12e   : > { %v715_v10 = vpop.permute.xlu0 %714 }
 0x12f   : > { %v824_v0 = vsel %vm816_vm7, %v807_v7, %v715_v10  ;;  %480 = vrot.lane.b32.xlu1 %v3037_v32, %s2377_s26  ;;  %v1438_v32 = vsel %vm411_vm1, %v1435_v42, %v1437_v37  ;;  %v2101_v42 = vld [vmem:[%s2440_s24 + $0xe8] sm:$0x3]  ;;  %v1501_v37 = vsel %vm748_vm3, %v2756_v4, %v3163_v44 }
 0x130   : > { %393 = vrot.lane.b32.xlu0 %v362_v16, %s2376_s25  ;;  %2236 = vmatmul.mubr.msk.f32.gmra.mxu0 %vm841_vm8, %v824_v0  ;;  %v1354_v11 = vrot.slane %v2101_v42, 1  ;;  %v1442_v38 = vrot.slane %v2101_v42, 2 }
 0x131   : > { %v1459_v33 = vpop.permute.xlu1 %1458 }
 0x132   : > { %v1563_v5 = vsel %vm816_vm7, %v1547_v56, %v1459_v33  ;;  %v1213_v58 = vpop.permute.xlu0 %1212  ;;  %v1355_v43 = vsel %vm322_vm0, %v1352_v55, %v1354_v11 }
 0x133   : > { %1178 = vrot.lane.b32.xlu1 %v611_v51, %s2376_s25  ;;  %2276 = vmatmul.mubr.msk.f32.gmra.mxu1 %vm841_vm8, %v1563_v5  ;;  %v1516_v61 = vsel %vm765_vm4, %v1500_v31, %v1213_v58 }
 0x134   : > { %726 = vrot.lane.b32.xlu0 %v3093_v40, %s2380_s19  ;;  %v2099_v40 = vld [vmem:[%s2440_s24 + $0xd8] sm:$0xff]  ;;  %s2042_s24 = sshll.u32 %s2358_s12, 3  ;;  %s3543_s12 = smov (!%p211_p7, %s2358_s12), 1 }
 0x135   : > { %v533_v15 = vpop.permute.xlu1 %532  ;;  %v1351_v8 = vrot.slane %v2099_v40, 1  ;;  %v1439_v27 = vrot.slane %v2099_v40, 2  ;;  %p201_p6 = scmp.lt.s32.totalorder %s2042_s24, 15  ;;  %s214_s8 = sadd.s32 %s2046_s7, %s3543_s12 }
 0x136   : > { %v471_v53 = vpop.permute.xlu0 %470  ;;  %v791_v34 = vsel %vm782_vm5, %v774_v24, %v533_v15  ;;  %s2047_s9 = sshll.u32 %s214_s8, 1 }
 0x137   : > { %1470 = vrot.lane.b32.xlu1 %v1438_v32, %s2380_s19  ;;  %v1353_v19 = vsel %vm322_vm0, %v1351_v8, %v1352_v55  ;;  %v775_v0 = vsel %vm765_vm4, %v758_v2, %v471_v53  ;;  %s3541_s24 = smov (!%p201_p6, %s2042_s24), 15  ;;  %s216_s11 = scalar_lea.vmem %s3527_s3, %s2047_s9 }
 0x138   : > { %1224 = vrot.lane.b32.xlu0 %v3147_v54, %s2377_s26  ;;  %s2043_s25 = sshll.u32 %s3541_s24, 2 }
 0x139   : > { %v1277_v63 = vpop.permute.xlu1 %1276 }
 0x13a   : > { %v1215_v12 = vpop.permute.xlu0 %1214  ;;  %v1532_v52 = vsel %vm782_vm5, %v1516_v61, %v1277_v63 }
 0x13b   : > { %544 = vrot.lane.b32.xlu1 %v3089_v45, %s2378_s27  ;;  %v1517_v5 = vsel %vm765_vm4, %v1501_v37, %v1215_v12 }
 0x13c   : > { %482 = vrot.lane.b32.xlu0 %v451_v59, %s2377_s26 }
 0x13d   : > { %v629_v17 = vpop.permute.xlu1 %628 }
 0x13e   : > { %v535_v3 = vpop.permute.xlu0 %534  ;;  %v808_v35 = vsel %vm799_vm6, %v791_v34, %v629_v17 }
 0x13f   : > { %1288 = vrot.lane.b32.xlu1 %v2099_v40, %s2378_s27  ;;  %v792_v48 = vsel %vm782_vm5, %v775_v0, %v535_v3 }
 0x140   : > { %1226 = vrot.lane.b32.xlu0 %v699_v18, %s2377_s26  ;;  %s2044_s26 = sshll.u32 %s3539_s13, 6 }
 0x141   : > { %v1373_v57 = vpop.permute.xlu1 %1372 }
 0x142   : > { %v1279_v20 = vpop.permute.xlu0 %1278  ;;  %v1548_v1 = vsel %vm799_vm6, %v1532_v52, %v1373_v57 }
 0x143   : > { %640 = vrot.lane.b32.xlu1 %v3109_v6, %s2379_s20  ;;  %v1440_v6 = vrot.slane %v2100_v47, 2  ;;  %v1533_v28 = vsel %vm782_vm5, %v1517_v5, %v1279_v20 }
 0x144   : > { %546 = vrot.lane.b32.xlu0 %v3096_v49, %s2378_s27 }
 0x145   : > { %v631_v21 = vpop.permute.xlu1 %630  ;;  %v1441_v13 = vsel %vm411_vm1, %v1439_v27, %v1440_v6 }
 0x146   : > { %v3205_v60 = vpop.permute.xlu0 %383  ;;  %v809_v56 = vsel %vm799_vm6, %v792_v48, %v631_v21 }
 0x147   : > { %1384 = vrot.lane.b32.xlu1 %v1353_v19, %s2379_s20  ;;  %v759_v3 = vsel %vm748_vm3, %v2749_v62, %v3205_v60 }
 0x148   : > { %1290 = vrot.lane.b32.xlu0 %v2100_v47, %s2378_s27  ;;  %s205_s27 = sadd.s32 %s2044_s26, %s2043_s25 }
 0x149   : > { %v1169_v29 = vpop.permute.xlu1 %1168 }
 0x14a   : > { %v717_v30 = vpop.permute.xlu0 %716  ;;  %v1502_v20 = vsel %vm748_vm3, %v2859_v23, %v1169_v29 }
 0x14b   : > { %v825_v36 = vsel %vm816_vm7, %v808_v35, %v717_v30  ;;  %728 = vrot.lane.b32.xlu1 %v3147_v54, %s2380_s19  ;;  %v1443_v54 = vsel %vm411_vm1, %v1440_v6, %v1442_v38 }
 0x14c   : > { %642 = vrot.lane.b32.xlu0 %v611_v51, %s2379_s20  ;;  %2238 = vmatprep.mubr.msk.f32.mxu0 %vm841_vm8, %v825_v36 }
 0x14d   : > { %v1461_v39 = vpop.permute.xlu1 %1460 }
 0x14e   : > { %v1564_v16 = vsel %vm816_vm7, %v1548_v1, %v1461_v39  ;;  %v1375_v50 = vpop.permute.xlu0 %1374 }
 0x14f   : > { %1472 = vrot.lane.b32.xlu1 %v1441_v13, %s2380_s19  ;;  %2278 = vmatprep.mubr.msk.f32.mxu1 %vm841_vm8, %v1564_v16  ;;  %v1549_v58 = vsel %vm799_vm6, %v1533_v28, %v1375_v50 }
 0x150   : > { %1386 = vrot.lane.b32.xlu0 %v1355_v43, %s2379_s20  ;;  %s2045_s20 = sshll.u32 %s205_s27, 3 }
 0x151   : > { %v473_v7 = vpop.permute.xlu1 %472  ;;  %s3279_s6 = scalar_lea.vmem %s3526_s2, %s2045_s20 }
 0x152   : > { %v386_v10 = vpop.permute.xlu0 %385  ;;  %v776_v8 = vsel %vm765_vm4, %v759_v3, %v473_v7 }
 0x153   : > { %1474 = vrot.lane.b32.xlu1 %v1443_v54, %s2380_s19  ;;  %v760_v11 = vsel %vm748_vm3, %v2756_v4, %v386_v10 }
 0x154   : > { %730 = vrot.lane.b32.xlu0 %v699_v18, %s2380_s19 }
 0x155   : > { %v1171_v51 = vpop.permute.xlu1 %1170 }
 0x156   : > { %v719_v33 = vpop.permute.xlu0 %718  ;;  %v1503_v30 = vsel %vm748_vm3, %v2866_v26, %v1171_v51 }
 0x157   : > { %v826_v14 = vsel %vm816_vm7, %v809_v56, %v719_v33 }
 0x158   : > { %2239 = vmatmul.mubr.msk.f32.gmra.mxu0 %vm841_vm8, %v826_v14 }
 0x159   : > { %v1463_v32 = vpop.permute.xlu1 %1462 }
 0x15a   : > { %v1565_v15 = vsel %vm816_vm7, %v1549_v58, %v1463_v32  ;;  %v1217_v41 = vpop.permute.xlu0 %1216 }
 0x15b   : > { %2279 = vmatmul.mubr.msk.f32.gmra.mxu1 %vm841_vm8, %v1565_v15  ;;  %v1518_v42 = vsel %vm765_vm4, %v1502_v20, %v1217_v41 }
 0x15d   : > { %v537_v44 = vpop.permute.xlu1 %536 }
 0x15e   : > { %v475_v53 = vpop.permute.xlu0 %474  ;;  %v793_v55 = vsel %vm782_vm5, %v776_v8, %v537_v44 }
 0x15f   : > { %v777_v31 = vsel %vm765_vm4, %v760_v11, %v475_v53 }
 0x161   : > { %v1281_v63 = vpop.permute.xlu1 %1280 }
 0x162   : > { %v1219_v59 = vpop.permute.xlu0 %1218  ;;  %v1534_v62 = vsel %vm782_vm5, %v1518_v42, %v1281_v63 }
 0x163   : > { %v1519_v13 = vsel %vm765_vm4, %v1503_v30, %v1219_v59 }
 0x165   : > { %v633_v9 = vpop.permute.xlu1 %632 }
 0x166   : > { %v539_v12 = vpop.permute.xlu0 %538  ;;  %v810_v19 = vsel %vm799_vm6, %v793_v55, %v633_v9 }
 0x167   : > { %v794_v61 = vsel %vm782_vm5, %v777_v31, %v539_v12 }
 0x169   : > { %v1377_v40 = vpop.permute.xlu1 %1376 }
 0x16a   : > { %v1283_v17 = vpop.permute.xlu0 %1282  ;;  %v1550_v60 = vsel %vm799_vm6, %v1534_v62, %v1377_v40 }
 0x16b   : > { %v1535_v7 = vsel %vm782_vm5, %v1519_v13, %v1283_v17 }
 0x16d   : > { %v635_v18 = vpop.permute.xlu1 %634 }
 0x16e   : > { %v3254_v47 = vpop.permute.xlu0 %387  ;;  %v811_v38 = vsel %vm799_vm6, %v794_v61, %v635_v18 }
 0x16f   : > { %v761_v20 = vsel %vm748_vm3, %v2859_v23, %v3254_v47 }
 0x171   : > { %v3261_v57 = vpop.permute.xlu1 %1172 }
 0x172   : > { %v721_v21 = vpop.permute.xlu0 %720 }
 0x173   : > { %v827_v22 = vsel %vm816_vm7, %v810_v19, %v721_v21 }
 0x174   : > { %2241 = vmatprep.mubr.msk.f32.mxu0 %vm841_vm8, %v827_v22  ;;  %v1504_v22 = vsel %vm748_vm3, %v2972_v25, %v3261_v57 }
 0x175   : > { %v1465_v24 = vpop.permute.xlu1 %1464 }
 0x176   : > { %v1566_v27 = vsel %vm816_vm7, %v1550_v60, %v1465_v24  ;;  %v1379_v6 = vpop.permute.xlu0 %1378 }
 0x177   : > { %2281 = vmatprep.mubr.msk.f32.mxu1 %vm841_vm8, %v1566_v27  ;;  %v1551_v2 = vsel %vm799_vm6, %v1535_v7, %v1379_v6 }
 0x179   : > { %v477_v34 = vpop.permute.xlu1 %476 }
 0x17a   : > { %v3274_v29 = vpop.permute.xlu0 %389  ;;  %v778_v19 = vsel %vm765_vm4, %v761_v20, %v477_v34 }
 0x17c   : > { %v2228_v35 = vpop.f32.mrf.mxu0 }
 0x17d   : > { %1041 = vst.msk [vmem:[%s3279_s6 + $0x8] sm:$0xff] %vm1039_vm9, %v2228_v35  ;;  %v1095_v36 = vmul.f32 %v2228_v35, %v2228_v35  ;;  %v3289_v52 = vpop.permute.xlu1 %1174  ;;  %v1057_v39 = vsel %vm1039_vm9, %v2228_v35, 0.0  ;;  %v762_v35 = vsel %vm748_vm3, %v2866_v26, %v3274_v29 }
 0x17e   : > { %v960_v1 = vpop.f32.mrf.mxu0  ;;  %v723_v4 = vpop.permute.xlu0 %722 }
 0x17f   : > { %1040 = vst.msk [vmem:[%s3279_s6] sm:$0xff] %vm1039_vm9, %v960_v1  ;;  %v1056_v43 = vsel %vm1039_vm9, %v960_v1, 0.0  ;;  %v1094_v16 = vmul.f32 %v960_v1, %v960_v1  ;;  %v828_v50 = vsel %vm816_vm7, %v811_v38, %v723_v4  ;;  %v2268_v54 = vpop.f32.mrf.mxu1  ;;  %v1111_v0 = vsel %vm1039_vm9, %v1095_v36, 0.0 }
 0x180   : > { %v1058_v10 = vadd.f32 %v1057_v39, %v1056_v43  ;;  %2242 = vmatmul.mubr.msk.f32.gmra.mxu0 %vm841_vm8, %v828_v50  ;;  %2145 = vst.msk [vmem:[%s3279_s6 + $0x18] sm:$0xff] %vm1039_vm9, %v2268_v54  ;;  %v1833_v51 = vmul.f32 %v2268_v54, %v2268_v54  ;;  %v1795_v5 = vsel %vm1039_vm9, %v2268_v54, 0.0  ;;  %v1505_v39 = vsel %vm748_vm3, %v2979_v46, %v3289_v52 }
 0x181   : > { %v1110_v48 = vsel %vm1039_vm9, %v1094_v16, 0.0  ;;  %v1467_v37 = vpop.permute.xlu1 %1466  ;;  %v1698_v56 = vpop.f32.mrf.mxu1 }
 0x182   : > { %v1112_v33 = vadd.f32 %v1111_v0, %v1110_v48  ;;  %v1567_v14 = vsel %vm816_vm7, %v1551_v2, %v1467_v37  ;;  %2144 = vst.msk [vmem:[%s3279_s6 + $0x10] sm:$0xff] %vm1039_vm9, %v1698_v56  ;;  %v1794_v28 = vsel %vm1039_vm9, %v1698_v56, 0.0  ;;  %v1221_v58 = vpop.permute.xlu0 %1220  ;;  %v1832_v15 = vmul.f32 %v1698_v56, %v1698_v56 }
 0x183   : > { %v1796_v32 = vadd.f32 %v1795_v5, %v1794_v28  ;;  %2282 = vmatmul.mubr.msk.f32.gmra.mxu1 %vm841_vm8, %v1567_v14  ;;  %v1849_v41 = vsel %vm1039_vm9, %v1833_v51, 0.0  ;;  %v1520_v24 = vsel %vm765_vm4, %v1504_v22, %v1221_v58 }
 0x184   : > { %v1848_v44 = vsel %vm1039_vm9, %v1832_v15, 0.0 }
 0x185   : > { %v541_v53 = vpop.permute.xlu1 %540  ;;  %v3313_v63 = vadd.f32 %v1849_v41, %v1848_v44 }
 0x186   : > { %v479_v59 = vpop.permute.xlu0 %478  ;;  %v795_v21 = vsel %vm782_vm5, %v778_v19, %v541_v53 }
 0x187   : > { %v779_v13 = vsel %vm765_vm4, %v762_v35, %v479_v59 }
 0x189   : > { %v1285_v9 = vpop.permute.xlu1 %1284 }
 0x18a   : > { %v1223_v12 = vpop.permute.xlu0 %1222  ;;  %v1536_v23 = vsel %vm782_vm5, %v1520_v24, %v1285_v9 }
 0x18b   : > { %v1521_v29 = vsel %vm765_vm4, %v1505_v39, %v1223_v12 }
 0x18d   : > { %v637_v40 = vpop.permute.xlu1 %636 }
 0x18e   : > { %v543_v17 = vpop.permute.xlu0 %542  ;;  %v812_v62 = vsel %vm799_vm6, %v795_v21, %v637_v40 }
 0x18f   : > { %v796_v43 = vsel %vm782_vm5, %v779_v13, %v543_v17 }
 0x191   : > { %v1381_v18 = vpop.permute.xlu1 %1380 }
 0x192   : > { %v1287_v3 = vpop.permute.xlu0 %1286  ;;  %v1552_v47 = vsel %vm799_vm6, %v1536_v23, %v1381_v18 }
 0x193   : > { %v1537_v28 = vsel %vm782_vm5, %v1521_v29, %v1287_v3 }
 0x195   : > { %v639_v8 = vpop.permute.xlu1 %638 }
 0x196   : > { %v3315_v55 = vpop.permute.xlu0 %391  ;;  %v813_v16 = vsel %vm799_vm6, %v796_v43, %v639_v8 }
 0x199   : > { %v3322_v42 = vpop.permute.xlu1 %1176 }
 0x19a   : > { %v725_v60 = vpop.permute.xlu0 %724  ;;  %v1506_v23 = vsel %vm748_vm3, %v3089_v45, %v3322_v42 }
 0x19b   : > { %v829_v27 = vsel %vm816_vm7, %v812_v62, %v725_v60 }
 0x19c   : > { %2244 = vmatprep.mubr.msk.f32.mxu0 %vm841_vm8, %v829_v27 }
 0x19d   : > { %v1469_v6 = vpop.permute.xlu1 %1468 }
 0x19e   : > { %v1568_v34 = vsel %vm816_vm7, %v1552_v47, %v1469_v6  ;;  %v1383_v11 = vpop.permute.xlu0 %1382 }
 0x19f   : > { %2284 = vmatprep.mubr.msk.f32.mxu1 %vm841_vm8, %v1568_v34 }
 0x1a0   : > { %v2231_v57 = vpop.f32.mrf.mxu0 }
 0x1a1   : > { %1043 = vst.msk [vmem:[%s3279_s6 + $0x28] sm:$0xff] %vm1039_vm9, %v2231_v57  ;;  %v481_v31 = vpop.permute.xlu1 %480  ;;  %v1097_v30 = vmul.f32 %v2231_v57, %v2231_v57  ;;  %v1061_v50 = vsel %vm1039_vm9, %v2231_v57, 0.0 }
 0x1a2   : > { %v970_v61 = vpop.f32.mrf.mxu0  ;;  %v3340_v36 = vpop.permute.xlu0 %393 }
 0x1a3   : > { %1042 = vst.msk [vmem:[%s3279_s6 + $0x20] sm:$0xff] %vm1039_vm9, %v970_v61  ;;  %v1059_v38 = vsel %vm1039_vm9, %v970_v61, 0.0  ;;  %v1096_v1 = vmul.f32 %v970_v61, %v970_v61  ;;  %v2271_v4 = vpop.f32.mrf.mxu1  ;;  %v1115_v0 = vsel %vm1039_vm9, %v1097_v30, 0.0  ;;  %v764_v45 = vsel %vm748_vm3, %v2979_v46, %v3340_v36 }
 0x1a4   : > { %v1060_v26 = vadd.f32 %v1059_v38, %v1058_v10  ;;  %2147 = vst.msk [vmem:[%s3279_s6 + $0x38] sm:$0xff] %vm1039_vm9, %v2271_v4  ;;  %v1835_v51 = vmul.f32 %v2271_v4, %v2271_v4  ;;  %v1799_v58 = vsel %vm1039_vm9, %v2271_v4, 0.0 }
 0x1a5   : > { %v1113_v54 = vsel %vm1039_vm9, %v1096_v1, 0.0  ;;  %v1179_v7 = vpop.permute.xlu1 %1178  ;;  %v1708_v2 = vpop.f32.mrf.mxu1 }
 0x1a6   : > { %v1114_v48 = vadd.f32 %v1113_v54, %v1112_v33  ;;  %2146 = vst.msk [vmem:[%s3279_s6 + $0x30] sm:$0xff] %vm1039_vm9, %v1708_v2  ;;  %v1797_v52 = vsel %vm1039_vm9, %v1708_v2, 0.0  ;;  %v727_v10 = vpop.permute.xlu0 %726  ;;  %v1834_v56 = vmul.f32 %v1708_v2, %v1708_v2  ;;  %v1062_v14 = vadd.f32 %v1061_v50, %v1060_v26 }
 0x1a7   : > { %v1798_v37 = vadd.f32 %v1797_v52, %v1796_v32  ;;  %v830_v5 = vsel %vm816_vm7, %v813_v16, %v727_v10  ;;  %v1553_v33 = vsel %vm799_vm6, %v1537_v28, %v1383_v11  ;;  %v1853_v12 = vsel %vm1039_vm9, %v1835_v51, 0.0 }
 0x1a8   : > { %2245 = vmatmul.mubr.msk.f32.gmra.mxu0 %vm841_vm8, %v830_v5  ;;  %v1116_v15 = vadd.f32 %v1115_v0, %v1114_v48  ;;  %v1851_v41 = vsel %vm1039_vm9, %v1834_v56, 0.0  ;;  %v1507_v57 = vsel %vm748_vm3, %v3096_v49, %v1179_v7 }
 0x1a9   : > { %v1471_v44 = vpop.permute.xlu1 %1470  ;;  %v3366_v53 = vadd.f32 %v1799_v58, %v1798_v37  ;;  %v1852_v32 = vadd.f32 %v1851_v41, %v3313_v63  ;;  %v763_v63 = vsel %vm748_vm3, %v2972_v25, %v3315_v55 }
 0x1aa   : > { %v1569_v59 = vsel %vm816_vm7, %v1553_v33, %v1471_v44  ;;  %v1225_v9 = vpop.permute.xlu0 %1224  ;;  %v780_v62 = vsel %vm765_vm4, %v763_v63, %v481_v31 }
 0x1ab   : > { %2285 = vmatmul.mubr.msk.f32.gmra.mxu1 %vm841_vm8, %v1569_v59  ;;  %v3372_v40 = vadd.f32 %v1853_v12, %v1852_v32  ;;  %v1522_v34 = vsel %vm765_vm4, %v1506_v23, %v1225_v9 }
 0x1ad   : > { %v545_v17 = vpop.permute.xlu1 %544 }
 0x1ae   : > { %v483_v18 = vpop.permute.xlu0 %482  ;;  %v797_v60 = vsel %vm782_vm5, %v780_v62, %v545_v17 }
 0x1af   : > { %v781_v30 = vsel %vm765_vm4, %v764_v45, %v483_v18 }
 0x1b1   : > { %v1289_v3 = vpop.permute.xlu1 %1288 }
 0x1b2   : > { %v1227_v8 = vpop.permute.xlu0 %1226  ;;  %v1538_v25 = vsel %vm782_vm5, %v1522_v34, %v1289_v3 }
 0x1b3   : > { %v1523_v42 = vsel %vm765_vm4, %v1507_v57, %v1227_v8 }
 0x1b5   : > { %v641_v20 = vpop.permute.xlu1 %640 }
 0x1b6   : > { %v547_v19 = vpop.permute.xlu0 %546  ;;  %v814_v24 = vsel %vm799_vm6, %v797_v60, %v641_v20 }
 0x1b7   : > { %v798_v13 = vsel %vm782_vm5, %v781_v30, %v547_v19 }
 0x1b9   : > { %v1385_v21 = vpop.permute.xlu1 %1384 }
 0x1ba   : > { %v1291_v22 = vpop.permute.xlu0 %1290  ;;  %v1554_v55 = vsel %vm799_vm6, %v1538_v25, %v1385_v21 }
 0x1bb   : > { %v1539_v61 = vsel %vm782_vm5, %v1523_v42, %v1291_v22 }
 0x1bd   : > { %v729_v27 = vpop.permute.xlu1 %728 }
 0x1be   : > { %v831_v47 = vsel %vm816_vm7, %v814_v24, %v729_v27  ;;  %v643_v6 = vpop.permute.xlu0 %642 }
 0x1bf   : > { %2247 = vmatprep.mubr.msk.f32.mxu0 %vm841_vm8, %v831_v47  ;;  %v815_v1 = vsel %vm799_vm6, %v798_v13, %v643_v6 }
 0x1c1   : > { %v1473_v11 = vpop.permute.xlu1 %1472 }
 0x1c2   : > { %v1570_v31 = vsel %vm816_vm7, %v1554_v55, %v1473_v11  ;;  %v1387_v35 = vpop.permute.xlu0 %1386 }
 0x1c3   : > { %2287 = vmatprep.mubr.msk.f32.mxu1 %vm841_vm8, %v1570_v31  ;;  %v1555_v49 = vsel %vm799_vm6, %v1539_v61, %v1387_v35 }
 0x1c5   : > { %v1475_v38 = vpop.permute.xlu1 %1474 }
 0x1c6   : > { %v1571_v4 = vsel %vm816_vm7, %v1555_v49, %v1475_v38  ;;  %v731_v46 = vpop.permute.xlu0 %730 }
 0x1c7   : > { %v832_v36 = vsel %vm816_vm7, %v815_v1, %v731_v46  ;;  %2288 = vmatmul.mubr.msk.f32.gmra.mxu1 %vm841_vm8, %v1571_v4 }
 0x1c8   : > { %v2234_v39 = vpop.f32.mrf.mxu0  ;;  %2248 = vmatmul.mubr.msk.f32.gmra.mxu0 %vm841_vm8, %v832_v36 }
 0x1c9   : > { %1045 = vst.msk [vmem:[%s3279_s6 + $0x48] sm:$0xff] %vm1039_vm9, %v2234_v39  ;;  %v1099_v26 = vmul.f32 %v2234_v39, %v2234_v39  ;;  %v1065_v7 = vsel %vm1039_vm9, %v2234_v39, 0.0 }
 0x1ca   : > { %v980_v43 = vpop.f32.mrf.mxu0 }
 0x1cb   : > { %1044 = vst.msk [vmem:[%s3279_s6 + $0x40] sm:$0xff] %vm1039_vm9, %v980_v43  ;;  %v1063_v29 = vsel %vm1039_vm9, %v980_v43, 0.0  ;;  %v1098_v16 = vmul.f32 %v980_v43, %v980_v43  ;;  %v2274_v50 = vpop.f32.mrf.mxu1  ;;  %v1119_v37 = vsel %vm1039_vm9, %v1099_v26, 0.0 }
 0x1cc   : > { %v1064_v54 = vadd.f32 %v1063_v29, %v1062_v14  ;;  %2149 = vst.msk [vmem:[%s3279_s6 + $0x58] sm:$0xff] %vm1039_vm9, %v2274_v50  ;;  %v1837_v51 = vmul.f32 %v2274_v50, %v2274_v50  ;;  %v1803_v14 = vsel %vm1039_vm9, %v2274_v50, 0.0 }
 0x1cd   : > { %v1117_v2 = vsel %vm1039_vm9, %v1098_v16, 0.0  ;;  %v1718_v0 = vpop.f32.mrf.mxu1 }
 0x1ce   : > { %v1118_v48 = vadd.f32 %v1117_v2, %v1116_v15  ;;  %2148 = vst.msk [vmem:[%s3279_s6 + $0x50] sm:$0xff] %vm1039_vm9, %v1718_v0  ;;  %v1801_v52 = vsel %vm1039_vm9, %v1718_v0, 0.0  ;;  %v1836_v10 = vmul.f32 %v1718_v0, %v1718_v0  ;;  %v1066_v5 = vadd.f32 %v1065_v7, %v1064_v54 }
 0x1cf   : > { %v1802_v56 = vadd.f32 %v1801_v52, %v3366_v53  ;;  %v1857_v41 = vsel %vm1039_vm9, %v1837_v51, 0.0 }
 0x1d0   : > { %v1855_v28 = vsel %vm1039_vm9, %v1836_v10, 0.0  ;;  %v1120_v58 = vadd.f32 %v1119_v37, %v1118_v48 }
 0x1d1   : > { %v1856_v15 = vadd.f32 %v1855_v28, %v3372_v40  ;;  %v1804_v33 = vadd.f32 %v1803_v14, %v1802_v56 }
 0x1d3   : > { %v1858_v44 = vadd.f32 %v1857_v41, %v1856_v15 }
 0x1f0   : > { %v2237_v32 = vpop.f32.mrf.mxu0 }
 0x1f1   : > { %1047 = vst.msk [vmem:[%s3279_s6 + $0x68] sm:$0xff] %vm1039_vm9, %v2237_v32  ;;  %v1101_v9 = vmul.f32 %v2237_v32, %v2237_v32  ;;  %v1069_v40 = vsel %vm1039_vm9, %v2237_v32, 0.0 }
 0x1f2   : > { %v990_v59 = vpop.f32.mrf.mxu0 }
 0x1f3   : > { %1046 = vst.msk [vmem:[%s3279_s6 + $0x60] sm:$0xff] %vm1039_vm9, %v990_v59  ;;  %v1067_v53 = vsel %vm1039_vm9, %v990_v59, 0.0  ;;  %v1100_v12 = vmul.f32 %v990_v59, %v990_v59  ;;  %v2277_v17 = vpop.f32.mrf.mxu1  ;;  %v1123_v22 = vsel %vm1039_vm9, %v1101_v9, 0.0 }
 0x1f4   : > { %v1068_v18 = vadd.f32 %v1067_v53, %v1066_v5  ;;  %2151 = vst.msk [vmem:[%s3279_s6 + $0x78] sm:$0xff] %vm1039_vm9, %v2277_v17  ;;  %v1839_v19 = vmul.f32 %v2277_v17, %v2277_v17  ;;  %v1807_v24 = vsel %vm1039_vm9, %v2277_v17, 0.0 }
 0x1f5   : > { %v1121_v3 = vsel %vm1039_vm9, %v1100_v12, 0.0  ;;  %v1728_v8 = vpop.f32.mrf.mxu1 }
 0x1f6   : > { %v1122_v20 = vadd.f32 %v1121_v3, %v1120_v58  ;;  %2150 = vst.msk [vmem:[%s3279_s6 + $0x70] sm:$0xff] %vm1039_vm9, %v1728_v8  ;;  %v1805_v21 = vsel %vm1039_vm9, %v1728_v8, 0.0  ;;  %v1838_v63 = vmul.f32 %v1728_v8, %v1728_v8  ;;  %v1070_v60 = vadd.f32 %v1069_v40, %v1068_v18 }
 0x1f7   : > { %v1806_v62 = vadd.f32 %v1805_v21, %v1804_v33  ;;  %v1861_v34 = vsel %vm1039_vm9, %v1839_v19, 0.0 }
 0x1f8   : > { %v1859_v27 = vsel %vm1039_vm9, %v1838_v63, 0.0  ;;  %v1124_v23 = vadd.f32 %v1123_v22, %v1122_v20 }
 0x1f9   : > { %v1860_v47 = vadd.f32 %v1859_v27, %v1858_v44  ;;  %v1808_v6 = vadd.f32 %v1807_v24, %v1806_v62 }
 0x1fb   : > { %v1862_v25 = vadd.f32 %v1861_v34, %v1860_v47 }
 0x218   : > { %v2240_v55 = vpop.f32.mrf.mxu0 }
 0x219   : > { %1049 = vst.msk [vmem:[%s3279_s6 + $0x88] sm:$0xff] %vm1039_vm9, %v2240_v55  ;;  %v1103_v57 = vmul.f32 %v2240_v55, %v2240_v55  ;;  %v1073_v30 = vsel %vm1039_vm9, %v2240_v55, 0.0 }
 0x21a   : > { %v1000_v11 = vpop.f32.mrf.mxu0 }
 0x21b   : > { %1048 = vst.msk [vmem:[%s3279_s6 + $0x80] sm:$0xff] %vm1039_vm9, %v1000_v11  ;;  %v1071_v31 = vsel %vm1039_vm9, %v1000_v11, 0.0  ;;  %v1102_v35 = vmul.f32 %v1000_v11, %v1000_v11  ;;  %v2280_v45 = vpop.f32.mrf.mxu1  ;;  %v1127_v46 = vsel %vm1039_vm9, %v1103_v57, 0.0 }
 0x21c   : > { %v1072_v42 = vadd.f32 %v1071_v31, %v1070_v60  ;;  %2153 = vst.msk [vmem:[%s3279_s6 + $0x98] sm:$0xff] %vm1039_vm9, %v2280_v45  ;;  %v1841_v38 = vmul.f32 %v2280_v45, %v2280_v45  ;;  %v1811_v43 = vsel %vm1039_vm9, %v2280_v45, 0.0 }
 0x21d   : > { %v1125_v61 = vsel %vm1039_vm9, %v1102_v35, 0.0  ;;  %v1738_v13 = vpop.f32.mrf.mxu1 }
 0x21e   : > { %v1126_v49 = vadd.f32 %v1125_v61, %v1124_v23  ;;  %2152 = vst.msk [vmem:[%s3279_s6 + $0x90] sm:$0xff] %vm1039_vm9, %v1738_v13  ;;  %v1809_v1 = vsel %vm1039_vm9, %v1738_v13, 0.0  ;;  %v1840_v4 = vmul.f32 %v1738_v13, %v1738_v13  ;;  %v1074_v39 = vadd.f32 %v1073_v30, %v1072_v42 }
 0x21f   : > { %v1810_v36 = vadd.f32 %v1809_v1, %v1808_v6  ;;  %v1865_v54 = vsel %vm1039_vm9, %v1841_v38, 0.0 }
 0x220   : > { %v1863_v26 = vsel %vm1039_vm9, %v1840_v4, 0.0  ;;  %v1128_v29 = vadd.f32 %v1127_v46, %v1126_v49 }
 0x221   : > { %v1864_v16 = vadd.f32 %v1863_v26, %v1862_v25  ;;  %v1812_v50 = vadd.f32 %v1811_v43, %v1810_v36 }
 0x223   : > { %v1866_v7 = vadd.f32 %v1865_v54, %v1864_v16 }
 0x240   : > { %v2243_v2 = vpop.f32.mrf.mxu0 }
 0x241   : > { %1051 = vst.msk [vmem:[%s3279_s6 + $0xa8] sm:$0xff] %vm1039_vm9, %v2243_v2  ;;  %v1105_v48 = vmul.f32 %v2243_v2, %v2243_v2  ;;  %v1077_v56 = vsel %vm1039_vm9, %v2243_v2, 0.0 }
 0x242   : > { %v1010_v0 = vpop.f32.mrf.mxu0 }
 0x243   : > { %1050 = vst.msk [vmem:[%s3279_s6 + $0xa0] sm:$0xff] %vm1039_vm9, %v1010_v0  ;;  %v1075_v51 = vsel %vm1039_vm9, %v1010_v0, 0.0  ;;  %v1104_v52 = vmul.f32 %v1010_v0, %v1010_v0  ;;  %v2283_v10 = vpop.f32.mrf.mxu1  ;;  %v1131_v41 = vsel %vm1039_vm9, %v1105_v48, 0.0 }
 0x244   : > { %v1076_v37 = vadd.f32 %v1075_v51, %v1074_v39  ;;  %2155 = vst.msk [vmem:[%s3279_s6 + $0xb8] sm:$0xff] %vm1039_vm9, %v2283_v10  ;;  %v1843_v58 = vmul.f32 %v2283_v10, %v2283_v10  ;;  %v1815_v59 = vsel %vm1039_vm9, %v2283_v10, 0.0 }
 0x245   : > { %v1129_v5 = vsel %vm1039_vm9, %v1104_v52, 0.0  ;;  %v1748_v14 = vpop.f32.mrf.mxu1 }
 0x246   : > { %v1130_v28 = vadd.f32 %v1129_v5, %v1128_v29  ;;  %2154 = vst.msk [vmem:[%s3279_s6 + $0xb0] sm:$0xff] %vm1039_vm9, %v1748_v14  ;;  %v1813_v15 = vsel %vm1039_vm9, %v1748_v14, 0.0  ;;  %v1842_v33 = vmul.f32 %v1748_v14, %v1748_v14  ;;  %v1078_v32 = vadd.f32 %v1077_v56, %v1076_v37 }
 0x247   : > { %v1814_v44 = vadd.f32 %v1813_v15, %v1812_v50  ;;  %v1869_v18 = vsel %vm1039_vm9, %v1843_v58, 0.0 }
 0x248   : > { %v1867_v9 = vsel %vm1039_vm9, %v1842_v33, 0.0  ;;  %v1132_v53 = vadd.f32 %v1131_v41, %v1130_v28 }
 0x249   : > { %v1868_v12 = vadd.f32 %v1867_v9, %v1866_v7  ;;  %v1816_v17 = vadd.f32 %v1815_v59, %v1814_v44 }
 0x24b   : > { %v1870_v40 = vadd.f32 %v1869_v18, %v1868_v12 }
 0x268   : > { %v2246_v3 = vpop.f32.mrf.mxu0 }
 0x269   : > { %1053 = vst.msk [vmem:[%s3279_s6 + $0xc8] sm:$0xff] %vm1039_vm9, %v2246_v3  ;;  %v1107_v24 = vmul.f32 %v2246_v3, %v2246_v3  ;;  %v1081_v55 = vsel %vm1039_vm9, %v2246_v3, 0.0 }
 0x26a   : > { %v1020_v8 = vpop.f32.mrf.mxu0 }
 0x26b   : > { %1052 = vst.msk [vmem:[%s3279_s6 + $0xc0] sm:$0xff] %vm1039_vm9, %v1020_v8  ;;  %v2286_v20 = vpop.f32.mrf.mxu1  ;;  %v1106_v63 = vmul.f32 %v1020_v8, %v1020_v8  ;;  %v1079_v22 = vsel %vm1039_vm9, %v1020_v8, 0.0  ;;  %v1135_v35 = vsel %vm1039_vm9, %v1107_v24, 0.0 }
 0x26c   : > { %2157 = vst.msk [vmem:[%s3279_s6 + $0xd8] sm:$0xff] %vm1039_vm9, %v2286_v20  ;;  %v1080_v27 = vadd.f32 %v1079_v22, %v1078_v32  ;;  %v1845_v47 = vmul.f32 %v2286_v20, %v2286_v20  ;;  %v1819_v57 = vsel %vm1039_vm9, %v2286_v20, 0.0 }
 0x26d   : > { %v1758_v19 = vpop.f32.mrf.mxu1  ;;  %v1133_v23 = vsel %vm1039_vm9, %v1106_v63, 0.0 }
 0x26e   : > { %2156 = vst.msk [vmem:[%s3279_s6 + $0xd0] sm:$0xff] %vm1039_vm9, %v1758_v19  ;;  %v1844_v21 = vmul.f32 %v1758_v19, %v1758_v19  ;;  %v1817_v62 = vsel %vm1039_vm9, %v1758_v19, 0.0  ;;  %v1134_v11 = vadd.f32 %v1133_v23, %v1132_v53  ;;  %v1873_v45 = vsel %vm1039_vm9, %v1845_v47, 0.0 }
 0x26f   : > { %v1818_v6 = vadd.f32 %v1817_v62, %v1816_v17  ;;  %v1082_v42 = vadd.f32 %v1081_v55, %v1080_v27 }
 0x270   : > { %v1871_v60 = vsel %vm1039_vm9, %v1844_v21, 0.0  ;;  %v1136_v16 = vadd.f32 %v1135_v35, %v1134_v11 }
 0x271   : > { %v1872_v34 = vadd.f32 %v1871_v60, %v1870_v40  ;;  %v1820_v61 = vadd.f32 %v1819_v57, %v1818_v6 }
 0x273   : > { %v1874_v4 = vadd.f32 %v1873_v45, %v1872_v34 }
 0x287   : > { %v2289_v25 = vpop.f32.mrf.mxu1 }
 0x288   : > { %v2249_v31 = vpop.f32.mrf.mxu0  ;;  %2159 = vst.msk [vmem:[%s3279_s6 + $0xf8] sm:$0xff] %vm1039_vm9, %v2289_v25  ;;  %v1847_v13 = vmul.f32 %v2289_v25, %v2289_v25  ;;  %v1823_v26 = vsel %vm1039_vm9, %v2289_v25, 0.0 }
 0x289   : > { %1055 = vst.msk [vmem:[%s3279_s6 + $0xe8] sm:$0xff] %vm1039_vm9, %v2249_v31  ;;  %v1768_v30 = vpop.f32.mrf.mxu1  ;;  %v1109_v46 = vmul.f32 %v2249_v31, %v2249_v31  ;;  %v1085_v54 = vsel %vm1039_vm9, %v2249_v31, 0.0 }
 0x28a   : > { %v1030_v49 = vpop.f32.mrf.mxu0  ;;  %2158 = vst.msk [vmem:[%s3279_s6 + $0xf0] sm:$0xff] %vm1039_vm9, %v1768_v30  ;;  %v1821_v38 = vsel %vm1039_vm9, %v1768_v30, 0.0  ;;  %v1846_v1 = vmul.f32 %v1768_v30, %v1768_v30  ;;  %v1877_v48 = vsel %vm1039_vm9, %v1847_v13, 0.0 }
 0x28b   : > { %1054 = vst.msk [vmem:[%s3279_s6 + $0xe0] sm:$0xff] %vm1039_vm9, %v1030_v49  ;;  %v1083_v36 = vsel %vm1039_vm9, %v1030_v49, 0.0  ;;  %v1108_v39 = vmul.f32 %v1030_v49, %v1030_v49  ;;  %v1822_v43 = vadd.f32 %v1821_v38, %v1820_v61  ;;  %v1139_v10 = vsel %vm1039_vm9, %v1109_v46, 0.0 }
 0x28c   : > { %v1084_v29 = vadd.f32 %v1083_v36, %v1082_v42  ;;  %v1875_v50 = vsel %vm1039_vm9, %v1846_v1, 0.0 }
 0x28d   : > { %v1137_v7 = vsel %vm1039_vm9, %v1108_v39, 0.0  ;;  %v1824_v2 = vadd.f32 %v1823_v26, %v1822_v43  ;;  %v1876_v0 = vadd.f32 %v1875_v50, %v1874_v4 }
 0x28e   : > { %v1086_v51 = vadd.f32 %v1085_v54, %v1084_v29  ;;  %v1138_v52 = vadd.f32 %v1137_v7, %v1136_v16 }
 0x28f   : > { %v1825_v37 = vrot.slane %v1824_v2, 4  ;;  %v1878_v56 = vadd.f32 %v1877_v48, %v1876_v0 }
 0x290   : > { %v1087_v5 = vrot.slane %v1086_v51, 4  ;;  %v1140_v14 = vadd.f32 %v1139_v10, %v1138_v52 }
 0x291   : > { %v1826_v28 = vadd.f32 %v1825_v37, %v1824_v2  ;;  %v1879_v58 = vrot.slane %v1878_v56, 4 }
 0x292   : > { %v1088_v15 = vadd.f32 %v1087_v5, %v1086_v51  ;;  %v1141_v33 = vrot.slane %v1140_v14, 4 }
 0x293   : > { %v1827_v41 = vrot.slane %v1826_v28, 2  ;;  %v1880_v44 = vadd.f32 %v1879_v58, %v1878_v56 }
 0x294   : > { %v1089_v32 = vrot.slane %v1088_v15, 2  ;;  %v1142_v59 = vadd.f32 %v1141_v33, %v1140_v14 }
 0x295   : > { %v1828_v9 = vadd.f32 %v1827_v41, %v1826_v28  ;;  %v1881_v53 = vrot.slane %v1880_v44, 2 }
 0x296   : > { %v1090_v12 = vadd.f32 %v1089_v32, %v1088_v15  ;;  %v1143_v17 = vrot.slane %v1142_v59, 2 }
 0x297   : > { %v1829_v18 = vrot.slane %v1828_v9, 1  ;;  %v1882_v40 = vadd.f32 %v1881_v53, %v1880_v44 }
 0x298   : > { %v1091_v3 = vrot.slane %v1090_v12, 1  ;;  %v1144_v8 = vadd.f32 %v1143_v17, %v1142_v59 }
 0x299   : > { %v1830_v20 = vadd.f32 %v1829_v18, %v1828_v9  ;;  %v1883_v19 = vrot.slane %v1882_v40, 1 }
 0x29a   : > { %v1092_v21 = vadd.f32 %v1091_v3, %v1090_v12  ;;  %v1145_v63 = vrot.slane %v1144_v8, 1 }
 0x29b   : > { %v1884_v22 = vadd.f32 %v1883_v19, %v1882_v40 }
 0x29c   : > { %v1146_v62 = vadd.f32 %v1145_v63, %v1144_v8  ;;  %v1831_v60 = vadd.f32 %v1830_v20, %v1092_v21 }
 0x29e   : > { %v1885_v24 = vadd.f32 %v1884_v22, %v1146_v62  ;;  %1887 = vst.msk [vmem:[%s216_s11] sm:$0x1] %vm1886_vm10, %v1831_v60 }
 0x2a0   : > { %1888 = vst.msk [vmem:[%s216_s11 + $0x1] sm:$0x1] %vm1886_vm10, %v1885_v24 }
 0x2a1 PF: > { %s14_s16 = sadd.s32 1, %s2374_s16   ;;  %s3528_s12 = smov %s2366_s14 }
 0x2a2   : > { %p11_p8 = scmp.ge.s32.totalorder %s14_s16, 6   ;;  %s3529_s13 = smov %s2370_s15 }
 0x2a3   : > { %s3530_s14 = smov %s3533_s17  ;;  %s3531_s15 = smov %s3537_s18 }
 0x2a4   :  { %13 = sbr.rel (!%p11_p8) target bundleno = 3 (0x3), region = 75 }

</bundles_post_ra>
